<compile_context>
chip_gen: v6e
topology: v6e:2x2x1
jax: 0.10.0
libtpu: 0.0.40
codegen_flags: <defaults>
</compile_context>

<pallas_src>
import functools

import jax
import jax.numpy as jnp
from jax.experimental import pallas as pl
from jax.experimental.pallas import tpu as pltpu


def _round_up(x, m):
    return ((x + m - 1) // m) * m


# --------------------------- fused BasicLSTM kernel ---------------------------

def _basic_lstm_kernel(num_layers, L_pad, T_c, N_tile, H_pad, *refs):
    """One grid step = one batch tile: all LSTM layers + last-select + FC.

    refs = (x, lengths, [w_ih, w_hh, b] * num_layers, fc_w, fc_b,   # inputs
            out,                                                    # output
            hseq_scratch, pre_scratch)                              # scratch
    """
    x_ref = refs[0]                          # (L_pad, N_tile, D_pad)   bf16
    len_ref = refs[1]                        # (N_tile, 1)              int32
    layer_refs = refs[2:2 + 3 * num_layers]
    fcw_ref = refs[2 + 3 * num_layers]       # (H_pad, O_pad)           bf16
    fcb_ref = refs[3 + 3 * num_layers]       # (1, O_pad)               f32
    out_ref = refs[4 + 3 * num_layers]       # (N_tile, O_pad)          f32
    hseq_scr = refs[5 + 3 * num_layers]      # (L_pad, N_tile, H_pad)   bf16
    pre_scr = refs[6 + 3 * num_layers]       # (T_c*N_tile, 4*H_pad)    bf16

    num_chunks = L_pad // T_c
    last = jnp.zeros((N_tile, H_pad), jnp.float32)

    for layer in range(num_layers):
        wih_ref, whh_ref, b_ref = layer_refs[3 * layer:3 * layer + 3]
        is_last_layer = layer == num_layers - 1

        def chunk_body(ci, carry, _layer=layer, _is_last=is_last_layer,
                       _wih=wih_ref, _whh=whh_ref, _b=b_ref):
            # Time-chunked input projection: one lane-dense bf16 MXU matmul for
            # the next T_c timesteps, stored as bf16 (VMEM is O(T_c*N*4H)).
            t0 = pl.multiple_of(ci * T_c, T_c)
            if _layer == 0:
                x_chunk = x_ref[pl.ds(t0, T_c)]            # (T_c, N_tile, D_pad)
            else:
                x_chunk = hseq_scr[pl.ds(t0, T_c)]         # (T_c, N_tile, H_pad)
            x2 = x_chunk.reshape(T_c * N_tile, x_chunk.shape[-1])
            pre_scr[...] = (
                jnp.dot(x2, _wih[...], preferred_element_type=jnp.float32)
                + _b[...]
            ).astype(jnp.bfloat16)

            def step(tt, inner, _t0=t0):
                if _is_last:
                    h, c, lst = inner
                else:
                    h, c = inner
                row = pl.multiple_of(tt * N_tile, N_tile)
                # W_hh streamed from VMEM inside the step (not hoisted) so the
                # big weight value is never live across the whole loop.
                gates = (
                    pre_scr[pl.ds(row, N_tile), :].astype(jnp.float32)
                    + jnp.dot(h.astype(jnp.bfloat16), _whh[...],
                              preferred_element_type=jnp.float32)
                )                                          # (N_tile, 4*H_pad) f32

                # Per-gate slices are whole 128-lane tiles (H_pad % 128 == 0).
                i_g = jax.nn.sigmoid(gates[:, 0 * H_pad:1 * H_pad])
                f_g = jax.nn.sigmoid(gates[:, 1 * H_pad:2 * H_pad])
                g_g = jnp.tanh(gates[:, 2 * H_pad:3 * H_pad])
                o_g = jax.nn.sigmoid(gates[:, 3 * H_pad:4 * H_pad])

                c_new = f_g * c + i_g * g_g                # f32 cell state
                h_new = o_g * jnp.tanh(c_new)              # f32 hidden state

                t_glob = _t0 + tt
                if not _is_last:
                    # Hidden sequence stays in VMEM (bf16) for the next layer.
                    hseq_scr[t_glob] = h_new.astype(jnp.bfloat16)
                    return h_new, c_new
                # Fused last_by_index: keep h where t+1 == length (last layer only).
                sel = len_ref[...] == (t_glob + 1)
                lst = jnp.where(sel, h_new, lst)
                return h_new, c_new, lst

            return jax.lax.fori_loop(0, T_c, step, carry)

        zeros = jnp.zeros((N_tile, H_pad), jnp.float32)
        if is_last_layer:
            _, _, last = jax.lax.fori_loop(0, num_chunks, chunk_body,
                                           (zeros, zeros, last))
        else:
            jax.lax.fori_loop(0, num_chunks, chunk_body, (zeros, zeros))

    # Final Linear layer fused into the same kernel (bf16 MXU inputs, f32 accum).
    out_ref[...] = (
        jnp.dot(last.astype(jnp.bfloat16), fcw_ref[...],
                preferred_element_type=jnp.float32)
        + fcb_ref[...]
    )


# ------------------------------ parameter prep --------------------------------

def _pad_gate_matrix(w, din_pad, H, H_pad):
    """PyTorch (4H, din) gate matrix -> transposed, per-gate padded (din_pad, 4*H_pad)."""
    din = w.shape[1]
    wt = jnp.transpose(w).reshape(din, 4, H)                 # gate-major split of 4H
    wt = jnp.pad(wt, ((0, din_pad - din), (0, 0), (0, H_pad - H)))
    return wt.reshape(din_pad, 4 * H_pad)


def _pad_gate_bias(b_ih, b_hh, H, H_pad):
    b = (b_ih + b_hh).reshape(4, H)
    b = jnp.pad(b, ((0, 0), (0, H_pad - H)))
    return b.reshape(1, 4 * H_pad).astype(jnp.float32)


def init_basic_lstm_params(key, num_emb, emb_dim, rnn_size, output_dim, num_layers):
    keys = jax.random.split(key, 3 + 4 * num_layers)
    params = {}
    params["embedding"] = jax.random.normal(
        keys[0], (num_emb, emb_dim), jnp.float32) * 0.1

    bound = 1.0 / jnp.sqrt(rnn_size)
    lstm = []
    for layer in range(num_layers):
        din = emb_dim if layer == 0 else rnn_size
        k = jax.random.split(keys[1 + layer], 4)
        lstm.append({
            "w_ih": jax.random.uniform(k[0], (4 * rnn_size, din), jnp.float32,
                                       -bound, bound),
            "w_hh": jax.random.uniform(k[1], (4 * rnn_size, rnn_size), jnp.float32,
                                       -bound, bound),
            "b_ih": jax.random.uniform(k[2], (4 * rnn_size,), jnp.float32,
                                       -bound, bound),
            "b_hh": jax.random.uniform(k[3], (4 * rnn_size,), jnp.float32,
                                       -bound, bound),
        })
    params["lstm"] = lstm

    fbound = 1.0 / jnp.sqrt(rnn_size)
    params["fc_w"] = jax.random.uniform(keys[-2], (output_dim, rnn_size),
                                        jnp.float32, -fbound, fbound)
    params["fc_b"] = jax.random.uniform(keys[-1], (output_dim,),
                                        jnp.float32, -fbound, fbound)
    return params


# ------------------------------- forward pass ----------------------------------

def basic_lstm_forward(params, x_tokens, lengths):
    """x_tokens: (N, L) int32 ids, lengths: (N,) int in [1, L] -> (N, output_dim) f32."""
    N, L = x_tokens.shape
    D = params["embedding"].shape[1]
    H = params["lstm"][0]["w_hh"].shape[1]
    O = params["fc_w"].shape[0]
    num_layers = len(params["lstm"])

    # Lane/sublane padding (zero padding keeps the recurrence exact).
    D_pad = _round_up(D, 128)
    H_pad = _round_up(H, 128)
    O_pad = _round_up(O, 128)
    N_tile = min(_round_up(N, 8), 128)           # batch rows per grid step
    N_pad = _round_up(N, N_tile)
    T_c = L if L <= 32 else 32                   # time chunk for input projection
    L_pad = _round_up(L, T_c)

    # ---- glue: embedding lookup, time-major layout, zero padding (done once) ----
    emb = jnp.take(params["embedding"], x_tokens, axis=0)      # (N, L, D)
    xs = jnp.transpose(emb, (1, 0, 2))                          # (L, N, D) time-major
    xs = jnp.pad(xs, ((0, L_pad - L), (0, N_pad - N), (0, D_pad - D)))
    xs = xs.astype(jnp.bfloat16)                                # single bf16 cast

    # Lengths as one int32 column (no H_pad-wide broadcast). Padded rows -> 0.
    len_col = jnp.pad(lengths.astype(jnp.int32).reshape(N, 1),
                      ((0, N_pad - N), (0, 0)))

    # ---- per-layer padded bf16 weights (zero padding keeps the math exact) ----
    layer_args, layer_specs = [], []
    for l, p in enumerate(params["lstm"]):
        din_pad = D_pad if l == 0 else H_pad
        layer_args.append(
            _pad_gate_matrix(p["w_ih"], din_pad, H, H_pad).astype(jnp.bfloat16))
        layer_args.append(
            _pad_gate_matrix(p["w_hh"], H_pad, H, H_pad).astype(jnp.bfloat16))
        layer_args.append(_pad_gate_bias(p["b_ih"], p["b_hh"], H, H_pad))
        layer_specs += [
            pl.BlockSpec((din_pad, 4 * H_pad), lambda b: (0, 0)),
            pl.BlockSpec((H_pad, 4 * H_pad), lambda b: (0, 0)),
            pl.BlockSpec((1, 4 * H_pad), lambda b: (0, 0)),
        ]

    fc_w = jnp.zeros((H_pad, O_pad), jnp.float32).at[:H, :O].set(
        jnp.transpose(params["fc_w"])).astype(jnp.bfloat16)
    fc_b = jnp.zeros((1, O_pad), jnp.float32).at[:, :O].set(
        params["fc_b"].astype(jnp.float32))

    # ---- explicit VMEM budget from the actual resident set (+ headroom) ----
    def _vmem_estimate():
        bf, f4 = 2, 4
        b = L_pad * N_tile * D_pad * bf * 2          # xs block (double-buffered)
        b += N_tile * 1 * 4 * 2                      # lengths column
        for l in range(num_layers):
            din_pad = D_pad if l == 0 else H_pad
            b += (din_pad * 4 * H_pad + H_pad * 4 * H_pad) * bf + 4 * H_pad * f4
        b += H_pad * O_pad * bf + O_pad * f4         # fc weights
        b += L_pad * N_tile * H_pad * bf             # hseq scratch (bf16)
        b += T_c * N_tile * 4 * H_pad * bf           # pre-activation scratch (bf16)
        b += N_tile * O_pad * f4 * 2                 # output block
        return b

    vmem_limit = int(min(max(2 * _vmem_estimate() + (1 << 20), 32 << 20), 100 << 20))

    kernel = functools.partial(_basic_lstm_kernel, num_layers, L_pad, T_c,
                               N_tile, H_pad)

    out = pl.pallas_call(
        kernel,
        grid=(N_pad // N_tile,),
        out_shape=jax.ShapeDtypeStruct((N_pad, O_pad), jnp.float32),
        in_specs=[
            pl.BlockSpec((L_pad, N_tile, D_pad), lambda b: (0, b, 0)),
            pl.BlockSpec((N_tile, 1), lambda b: (b, 0)),
            *layer_specs,
            pl.BlockSpec((H_pad, O_pad), lambda b: (0, 0)),
            pl.BlockSpec((1, O_pad), lambda b: (0, 0)),
        ],
        out_specs=pl.BlockSpec((N_tile, O_pad), lambda b: (b, 0)),
        scratch_shapes=[
            pltpu.VMEM((L_pad, N_tile, H_pad), jnp.bfloat16),   # inter-layer hidden seq
            pltpu.VMEM((T_c * N_tile, 4 * H_pad), jnp.bfloat16),  # gate pre-activations
        ],
        compiler_params=pltpu.CompilerParams(
            dimension_semantics=("parallel",),
            vmem_limit_bytes=vmem_limit,
        ),
    )(xs, len_col, *layer_args, fc_w, fc_b)

    # Un-pad (cheap glue).
    return out[:N, :O]


# ----------------------------------- main -------------------------------------

if __name__ == "__main__":
    # Small, forward-consistent shapes.
    N, L = 2, 8            # batch, sequence length
    NUM_EMB, EMB_DIM = 20, 16
    RNN_SIZE = 32
    NUM_LAYERS = 2
    OUTPUT_DIM = 4

    key = jax.random.PRNGKey(0)
    k_param, k_tok, _ = jax.random.split(key, 3)

    params = init_basic_lstm_params(k_param, NUM_EMB, EMB_DIM, RNN_SIZE,
                                    OUTPUT_DIM, NUM_LAYERS)

    x_tokens = jax.random.randint(k_tok, (N, L), 0, NUM_EMB, dtype=jnp.int32)
    lengths = jnp.array([L, 5], dtype=jnp.int32)              # (N,), in [1, L]

    fwd = jax.jit(basic_lstm_forward)
    out = jax.block_until_ready(fwd(params, x_tokens, lengths))
    assert out.shape == (N, OUTPUT_DIM)
    assert bool(jnp.all(jnp.isfinite(out)))
    print("KERNEL_OK")
</pallas_src>

<mosaic_0001>
module attributes {stable_mosaic.version = 11 : i64} {
  func.func @_basic_lstm_kernel(%arg0: i32, %arg1: memref<8x8x128xbf16, #tpu.memory_space<vmem>>, %arg2: memref<8x1xi32, #tpu.memory_space<vmem>>, %arg3: memref<128x512xbf16, #tpu.memory_space<vmem>>, %arg4: memref<128x512xbf16, #tpu.memory_space<vmem>>, %arg5: memref<1x512xf32, #tpu.memory_space<vmem>>, %arg6: memref<128x512xbf16, #tpu.memory_space<vmem>>, %arg7: memref<128x512xbf16, #tpu.memory_space<vmem>>, %arg8: memref<1x512xf32, #tpu.memory_space<vmem>>, %arg9: memref<128x128xbf16, #tpu.memory_space<vmem>>, %arg10: memref<1x128xf32, #tpu.memory_space<vmem>>, %arg11: memref<8x128xf32, #tpu.memory_space<vmem>>, %arg12: memref<8x8x128xbf16, #tpu.memory_space<vmem>>, %arg13: memref<64x512xbf16, #tpu.memory_space<vmem>>) attributes {dimension_semantics = [#tpu.dimension_semantics<parallel>], iteration_bounds = array<i64: 1>, scalar_prefetch = 0 : i64, scratch_operands = 2 : i64, tpu.core_type = #tpu.core_type<tc>, window_params = [{transform_indices = @transform_0, window_bounds = array<i64: 8, 8, 128>}, {transform_indices = @transform_1, window_bounds = array<i64: 8, 1>}, {pipeline_mode = #tpu.pipeline_mode<synchronous>, transform_indices = @transform_2, window_bounds = array<i64: 128, 512>}, {pipeline_mode = #tpu.pipeline_mode<synchronous>, transform_indices = @transform_3, window_bounds = array<i64: 128, 512>}, {pipeline_mode = #tpu.pipeline_mode<synchronous>, transform_indices = @transform_4, window_bounds = array<i64: 1, 512>}, {pipeline_mode = #tpu.pipeline_mode<synchronous>, transform_indices = @transform_5, window_bounds = array<i64: 128, 512>}, {pipeline_mode = #tpu.pipeline_mode<synchronous>, transform_indices = @transform_6, window_bounds = array<i64: 128, 512>}, {pipeline_mode = #tpu.pipeline_mode<synchronous>, transform_indices = @transform_7, window_bounds = array<i64: 1, 512>}, {pipeline_mode = #tpu.pipeline_mode<synchronous>, transform_indices = @transform_8, window_bounds = array<i64: 128, 128>}, {pipeline_mode = #tpu.pipeline_mode<synchronous>, transform_indices = @transform_9, window_bounds = array<i64: 1, 128>}, {transform_indices = @transform_10, window_bounds = array<i64: 8, 128>}]} {
    %cst = arith.constant 0.000000e+00 : f32
    %0 = vector.broadcast %cst : f32 to vector<8x128xf32>
    %cst_0 = arith.constant 0.000000e+00 : f32
    %1 = vector.broadcast %cst_0 : f32 to vector<8x128xf32>
    %c0_i32 = arith.constant 0 : i32
    %c8_i32 = arith.constant 8 : i32
    %2 = arith.muli %c0_i32, %c8_i32 : i32
    %3 = tpu.assume_multiple %2, 8 : i32
    %4 = arith.index_cast %3 : i32 to index
    %c0 = arith.constant 0 : index
    %c0_1 = arith.constant 0 : index
    %5 = vector.load %arg1[%4, %c0, %c0_1] : memref<8x8x128xbf16, #tpu.memory_space<vmem>>, vector<8x8x128xbf16>
    %6 = vector.shape_cast %5 : vector<8x8x128xbf16> to vector<64x128xbf16>
    %c0_2 = arith.constant 0 : index
    %c0_3 = arith.constant 0 : index
    %7 = vector.load %arg3[%c0_2, %c0_3] : memref<128x512xbf16, #tpu.memory_space<vmem>>, vector<128x512xbf16>
    %cst_4 = arith.constant dense<0.000000e+00> : vector<64x512xf32>
    %8 = tpu.matmul %6, %7, %cst_4 {dimension_numbers = #tpu.dot_dimension_numbers<[1], [0], [0], [1], [0, 0, 1, 1], [], []>} : vector<64x128xbf16>, vector<128x512xbf16>, vector<64x512xf32> -> vector<64x512xf32>
    %c0_5 = arith.constant 0 : index
    %c0_6 = arith.constant 0 : index
    %9 = vector.load %arg5[%c0_5, %c0_6] : memref<1x512xf32, #tpu.memory_space<vmem>>, vector<1x512xf32>
    %10 = vector.broadcast %9 : vector<1x512xf32> to vector<64x512xf32>
    %11 = arith.addf %8, %10 : vector<64x512xf32>
    %12 = arith.truncf %11 : vector<64x512xf32> to vector<64x512xbf16>
    %c0_7 = arith.constant 0 : index
    %c0_8 = arith.constant 0 : index
    %13 = vector.load %arg13[%c0_7, %c0_8] : memref<64x512xbf16, #tpu.memory_space<vmem>>, vector<64x512xbf16>
    tpu.vector_store %arg13[%c0_7, %c0_8], %12 {strides = array<i32>} : memref<64x512xbf16, #tpu.memory_space<vmem>>, vector<64x512xbf16>,
    %c0_i32_9 = arith.constant 0 : i32
    %c8_i32_10 = arith.constant 8 : i32
    %14 = arith.addi %c0_i32_9, %c8_i32_10 : i32
    %c1_i32 = arith.constant 1 : i32
    %15:2 = scf.for %arg14 = %c0_i32_9 to %14 step %c1_i32 iter_args(%arg15 = %1, %arg16 = %1) -> (vector<8x128xf32>, vector<8x128xf32>)  : i32 {
      %c8_i32_37 = arith.constant 8 : i32
      %38 = arith.muli %arg14, %c8_i32_37 : i32
      %39 = tpu.assume_multiple %38, 8 : i32
      %40 = arith.index_cast %39 : i32 to index
      %c0_38 = arith.constant 0 : index
      %41 = vector.load %arg13[%40, %c0_38] : memref<64x512xbf16, #tpu.memory_space<vmem>>, vector<8x512xbf16>
      %42 = arith.extf %41 : vector<8x512xbf16> to vector<8x512xf32>
      %43 = arith.truncf %arg15 : vector<8x128xf32> to vector<8x128xbf16>
      %c0_39 = arith.constant 0 : index
      %c0_40 = arith.constant 0 : index
      %44 = vector.load %arg4[%c0_39, %c0_40] : memref<128x512xbf16, #tpu.memory_space<vmem>>, vector<128x512xbf16>
      %cst_41 = arith.constant dense<0.000000e+00> : vector<8x512xf32>
      %45 = tpu.matmul %43, %44, %cst_41 {dimension_numbers = #tpu.dot_dimension_numbers<[1], [0], [0], [1], [0, 0, 1, 1], [], []>} : vector<8x128xbf16>, vector<128x512xbf16>, vector<8x512xf32> -> vector<8x512xf32>
      %46 = arith.addf %42, %45 : vector<8x512xf32>
      %47 = vector.extract_strided_slice %46 {offsets = [0, 0], sizes = [8, 128], strides = [1, 1]} : vector<8x512xf32> to vector<8x128xf32>
      %48 = arith.negf %47 : vector<8x128xf32>
      %49 = math.exp %48 : vector<8x128xf32>
      %cst_42 = arith.constant 1.000000e+00 : f32
      %50 = vector.broadcast %cst_42 : f32 to vector<8x128xf32>
      %51 = arith.addf %50, %49 : vector<8x128xf32>
      %52 = arith.divf %50, %51 : vector<8x128xf32>
      %53 = vector.extract_strided_slice %46 {offsets = [0, 128], sizes = [8, 128], strides = [1, 1]} : vector<8x512xf32> to vector<8x128xf32>
      %54 = arith.negf %53 : vector<8x128xf32>
      %55 = math.exp %54 : vector<8x128xf32>
      %cst_43 = arith.constant 1.000000e+00 : f32
      %56 = vector.broadcast %cst_43 : f32 to vector<8x128xf32>
      %57 = arith.addf %56, %55 : vector<8x128xf32>
      %58 = arith.divf %56, %57 : vector<8x128xf32>
      %59 = vector.extract_strided_slice %46 {offsets = [0, 256], sizes = [8, 128], strides = [1, 1]} : vector<8x512xf32> to vector<8x128xf32>
      %60 = math.tanh %59 : vector<8x128xf32>
      %61 = vector.extract_strided_slice %46 {offsets = [0, 384], sizes = [8, 128], strides = [1, 1]} : vector<8x512xf32> to vector<8x128xf32>
      %62 = arith.negf %61 : vector<8x128xf32>
      %63 = math.exp %62 : vector<8x128xf32>
      %cst_44 = arith.constant 1.000000e+00 : f32
      %64 = vector.broadcast %cst_44 : f32 to vector<8x128xf32>
      %65 = arith.addf %64, %63 : vector<8x128xf32>
      %66 = arith.divf %64, %65 : vector<8x128xf32>
      %67 = arith.mulf %58, %arg16 : vector<8x128xf32>
      %68 = arith.mulf %52, %60 : vector<8x128xf32>
      %69 = arith.addf %67, %68 : vector<8x128xf32>
      %70 = math.tanh %69 : vector<8x128xf32>
      %71 = arith.mulf %66, %70 : vector<8x128xf32>
      %72 = arith.addi %3, %arg14 : i32
      %73 = arith.truncf %71 : vector<8x128xf32> to vector<8x128xbf16>
      %74 = arith.index_cast %72 : i32 to index
      %c0_45 = arith.constant 0 : index
      %c0_46 = arith.constant 0 : index
      %75 = vector.load %arg12[%74, %c0_45, %c0_46] : memref<8x8x128xbf16, #tpu.memory_space<vmem>>, vector<1x8x128xbf16>
      %76 = vector.shape_cast %75 : vector<1x8x128xbf16> to vector<8x128xbf16>
      %77 = vector.shape_cast %73 : vector<8x128xbf16> to vector<1x8x128xbf16>
      tpu.vector_store %arg12[%74, %c0_45, %c0_46], %77 {strides = array<i32>} : memref<8x8x128xbf16, #tpu.memory_space<vmem>>, vector<1x8x128xbf16>,
      scf.yield %71, %69 : vector<8x128xf32>, vector<8x128xf32>
    }
    %c8_i32_11 = arith.constant 8 : i32
    %c1_i32_12 = arith.constant 1 : i32
    %cst_13 = arith.constant 0.000000e+00 : f32
    %16 = vector.broadcast %cst_13 : f32 to vector<8x128xf32>
    %c0_i32_14 = arith.constant 0 : i32
    %c8_i32_15 = arith.constant 8 : i32
    %17 = arith.muli %c0_i32_14, %c8_i32_15 : i32
    %18 = tpu.assume_multiple %17, 8 : i32
    %19 = arith.index_cast %18 : i32 to index
    %c0_16 = arith.constant 0 : index
    %c0_17 = arith.constant 0 : index
    %20 = vector.load %arg12[%19, %c0_16, %c0_17] : memref<8x8x128xbf16, #tpu.memory_space<vmem>>, vector<8x8x128xbf16>
    %21 = vector.shape_cast %20 : vector<8x8x128xbf16> to vector<64x128xbf16>
    %c0_18 = arith.constant 0 : index
    %c0_19 = arith.constant 0 : index
    %22 = vector.load %arg6[%c0_18, %c0_19] : memref<128x512xbf16, #tpu.memory_space<vmem>>, vector<128x512xbf16>
    %cst_20 = arith.constant dense<0.000000e+00> : vector<64x512xf32>
    %23 = tpu.matmul %21, %22, %cst_20 {dimension_numbers = #tpu.dot_dimension_numbers<[1], [0], [0], [1], [0, 0, 1, 1], [], []>} : vector<64x128xbf16>, vector<128x512xbf16>, vector<64x512xf32> -> vector<64x512xf32>
    %c0_21 = arith.constant 0 : index
    %c0_22 = arith.constant 0 : index
    %24 = vector.load %arg8[%c0_21, %c0_22] : memref<1x512xf32, #tpu.memory_space<vmem>>, vector<1x512xf32>
    %25 = vector.broadcast %24 : vector<1x512xf32> to vector<64x512xf32>
    %26 = arith.addf %23, %25 : vector<64x512xf32>
    %27 = arith.truncf %26 : vector<64x512xf32> to vector<64x512xbf16>
    %c0_23 = arith.constant 0 : index
    %c0_24 = arith.constant 0 : index
    %28 = vector.load %arg13[%c0_23, %c0_24] : memref<64x512xbf16, #tpu.memory_space<vmem>>, vector<64x512xbf16>
    tpu.vector_store %arg13[%c0_23, %c0_24], %27 {strides = array<i32>} : memref<64x512xbf16, #tpu.memory_space<vmem>>, vector<64x512xbf16>,
    %c0_i32_25 = arith.constant 0 : i32
    %c8_i32_26 = arith.constant 8 : i32
    %29 = arith.addi %c0_i32_25, %c8_i32_26 : i32
    %c1_i32_27 = arith.constant 1 : i32
    %30:3 = scf.for %arg14 = %c0_i32_25 to %29 step %c1_i32_27 iter_args(%arg15 = %16, %arg16 = %16, %arg17 = %0) -> (vector<8x128xf32>, vector<8x128xf32>, vector<8x128xf32>)  : i32 {
      %c8_i32_37 = arith.constant 8 : i32
      %38 = arith.muli %arg14, %c8_i32_37 : i32
      %39 = tpu.assume_multiple %38, 8 : i32
      %40 = arith.index_cast %39 : i32 to index
      %c0_38 = arith.constant 0 : index
      %41 = vector.load %arg13[%40, %c0_38] : memref<64x512xbf16, #tpu.memory_space<vmem>>, vector<8x512xbf16>
      %42 = arith.extf %41 : vector<8x512xbf16> to vector<8x512xf32>
      %43 = arith.truncf %arg15 : vector<8x128xf32> to vector<8x128xbf16>
      %c0_39 = arith.constant 0 : index
      %c0_40 = arith.constant 0 : index
      %44 = vector.load %arg7[%c0_39, %c0_40] : memref<128x512xbf16, #tpu.memory_space<vmem>>, vector<128x512xbf16>
      %cst_41 = arith.constant dense<0.000000e+00> : vector<8x512xf32>
      %45 = tpu.matmul %43, %44, %cst_41 {dimension_numbers = #tpu.dot_dimension_numbers<[1], [0], [0], [1], [0, 0, 1, 1], [], []>} : vector<8x128xbf16>, vector<128x512xbf16>, vector<8x512xf32> -> vector<8x512xf32>
      %46 = arith.addf %42, %45 : vector<8x512xf32>
      %47 = vector.extract_strided_slice %46 {offsets = [0, 0], sizes = [8, 128], strides = [1, 1]} : vector<8x512xf32> to vector<8x128xf32>
      %48 = arith.negf %47 : vector<8x128xf32>
      %49 = math.exp %48 : vector<8x128xf32>
      %cst_42 = arith.constant 1.000000e+00 : f32
      %50 = vector.broadcast %cst_42 : f32 to vector<8x128xf32>
      %51 = arith.addf %50, %49 : vector<8x128xf32>
      %52 = arith.divf %50, %51 : vector<8x128xf32>
      %53 = vector.extract_strided_slice %46 {offsets = [0, 128], sizes = [8, 128], strides = [1, 1]} : vector<8x512xf32> to vector<8x128xf32>
      %54 = arith.negf %53 : vector<8x128xf32>
      %55 = math.exp %54 : vector<8x128xf32>
      %cst_43 = arith.constant 1.000000e+00 : f32
      %56 = vector.broadcast %cst_43 : f32 to vector<8x128xf32>
      %57 = arith.addf %56, %55 : vector<8x128xf32>
      %58 = arith.divf %56, %57 : vector<8x128xf32>
      %59 = vector.extract_strided_slice %46 {offsets = [0, 256], sizes = [8, 128], strides = [1, 1]} : vector<8x512xf32> to vector<8x128xf32>
      %60 = math.tanh %59 : vector<8x128xf32>
      %61 = vector.extract_strided_slice %46 {offsets = [0, 384], sizes = [8, 128], strides = [1, 1]} : vector<8x512xf32> to vector<8x128xf32>
      %62 = arith.negf %61 : vector<8x128xf32>
      %63 = math.exp %62 : vector<8x128xf32>
      %cst_44 = arith.constant 1.000000e+00 : f32
      %64 = vector.broadcast %cst_44 : f32 to vector<8x128xf32>
      %65 = arith.addf %64, %63 : vector<8x128xf32>
      %66 = arith.divf %64, %65 : vector<8x128xf32>
      %67 = arith.mulf %58, %arg16 : vector<8x128xf32>
      %68 = arith.mulf %52, %60 : vector<8x128xf32>
      %69 = arith.addf %67, %68 : vector<8x128xf32>
      %70 = math.tanh %69 : vector<8x128xf32>
      %71 = arith.mulf %66, %70 : vector<8x128xf32>
      %72 = arith.addi %18, %arg14 : i32
      %c0_45 = arith.constant 0 : index
      %c0_46 = arith.constant 0 : index
      %73 = vector.load %arg2[%c0_45, %c0_46] : memref<8x1xi32, #tpu.memory_space<vmem>>, vector<8x1xi32>
      %c1_i32_47 = arith.constant 1 : i32
      %74 = arith.addi %72, %c1_i32_47 : i32
      %75 = vector.broadcast %74 : i32 to vector<8x1xi32>
      %76 = arith.cmpi eq, %73, %75 : vector<8x1xi32>
      %77 = vector.shape_cast %76 : vector<8x1xi1> to vector<8x1xi1>
      %78 = vector.broadcast %77 : vector<8x1xi1> to vector<8x128xi1>
      %79 = arith.select %78, %71, %arg17 : vector<8x128xi1>, vector<8x128xf32>
      scf.yield %71, %69, %79 : vector<8x128xf32>, vector<8x128xf32>, vector<8x128xf32>
    }
    %c8_i32_28 = arith.constant 8 : i32
    %c1_i32_29 = arith.constant 1 : i32
    %31 = arith.truncf %30#2 : vector<8x128xf32> to vector<8x128xbf16>
    %c0_30 = arith.constant 0 : index
    %c0_31 = arith.constant 0 : index
    %32 = vector.load %arg9[%c0_30, %c0_31] : memref<128x128xbf16, #tpu.memory_space<vmem>>, vector<128x128xbf16>
    %cst_32 = arith.constant dense<0.000000e+00> : vector<8x128xf32>
    %33 = tpu.matmul %31, %32, %cst_32 {dimension_numbers = #tpu.dot_dimension_numbers<[1], [0], [0], [1], [0, 0, 1, 1], [], []>} : vector<8x128xbf16>, vector<128x128xbf16>, vector<8x128xf32> -> vector<8x128xf32>
    %c0_33 = arith.constant 0 : index
    %c0_34 = arith.constant 0 : index
    %34 = vector.load %arg10[%c0_33, %c0_34] : memref<1x128xf32, #tpu.memory_space<vmem>>, vector<1x128xf32>
    %35 = vector.broadcast %34 : vector<1x128xf32> to vector<8x128xf32>
    %36 = arith.addf %33, %35 : vector<8x128xf32>
    %c0_35 = arith.constant 0 : index
    %c0_36 = arith.constant 0 : index
    %37 = vector.load %arg11[%c0_35, %c0_36] : memref<8x128xf32, #tpu.memory_space<vmem>>, vector<8x128xf32>
    tpu.vector_store %arg11[%c0_35, %c0_36], %36 {strides = array<i32>} : memref<8x128xf32, #tpu.memory_space<vmem>>, vector<8x128xf32>,
    return
  }
  func.func @transform_0(%arg0: i32) -> (i32, i32, i32) {
    %c0_i32 = arith.constant 0 : i32
    %c0_i32_0 = arith.constant 0 : i32
    %c0_i32_1 = arith.constant 0 : i32
    return %c0_i32, %arg0, %c0_i32_0 : i32, i32, i32
  }
  func.func @transform_1(%arg0: i32) -> (i32, i32) {
    %c0_i32 = arith.constant 0 : i32
    %c0_i32_0 = arith.constant 0 : i32
    return %arg0, %c0_i32 : i32, i32
  }
  func.func @transform_2(%arg0: i32) -> (i32, i32) {
    %c0_i32 = arith.constant 0 : i32
    %c0_i32_0 = arith.constant 0 : i32
    %c0_i32_1 = arith.constant 0 : i32
    return %c0_i32, %c0_i32_0 : i32, i32
  }
  func.func @transform_3(%arg0: i32) -> (i32, i32) {
    %c0_i32 = arith.constant 0 : i32
    %c0_i32_0 = arith.constant 0 : i32
    %c0_i32_1 = arith.constant 0 : i32
    return %c0_i32, %c0_i32_0 : i32, i32
  }
  func.func @transform_4(%arg0: i32) -> (i32, i32) {
    %c0_i32 = arith.constant 0 : i32
    %c0_i32_0 = arith.constant 0 : i32
    %c0_i32_1 = arith.constant 0 : i32
    return %c0_i32, %c0_i32_0 : i32, i32
  }
  func.func @transform_5(%arg0: i32) -> (i32, i32) {
    %c0_i32 = arith.constant 0 : i32
    %c0_i32_0 = arith.constant 0 : i32
    %c0_i32_1 = arith.constant 0 : i32
    return %c0_i32, %c0_i32_0 : i32, i32
  }
  func.func @transform_6(%arg0: i32) -> (i32, i32) {
    %c0_i32 = arith.constant 0 : i32
    %c0_i32_0 = arith.constant 0 : i32
    %c0_i32_1 = arith.constant 0 : i32
    return %c0_i32, %c0_i32_0 : i32, i32
  }
  func.func @transform_7(%arg0: i32) -> (i32, i32) {
    %c0_i32 = arith.constant 0 : i32
    %c0_i32_0 = arith.constant 0 : i32
    %c0_i32_1 = arith.constant 0 : i32
    return %c0_i32, %c0_i32_0 : i32, i32
  }
  func.func @transform_8(%arg0: i32) -> (i32, i32) {
    %c0_i32 = arith.constant 0 : i32
    %c0_i32_0 = arith.constant 0 : i32
    %c0_i32_1 = arith.constant 0 : i32
    return %c0_i32, %c0_i32_0 : i32, i32
  }
  func.func @transform_9(%arg0: i32) -> (i32, i32) {
    %c0_i32 = arith.constant 0 : i32
    %c0_i32_0 = arith.constant 0 : i32
    %c0_i32_1 = arith.constant 0 : i32
    return %c0_i32, %c0_i32_0 : i32, i32
  }
  func.func @transform_10(%arg0: i32) -> (i32, i32) {
    %c0_i32 = arith.constant 0 : i32
    %c0_i32_0 = arith.constant 0 : i32
    return %arg0, %c0_i32 : i32, i32
  }
}

</mosaic_0001>

<bundles_post_ra>
// kernel: basic_lstm_forward.1
= control target key start
LH: loop header
LB: loop body
LE: loop exit
PB: predicated region body
PF: predicated region fallthrough
CT: control target
= control target key end

     0   :  { %v2466_v1 = vmov 0   ;;  %v78_v37 = vlaneseq  ;;  %s3145_s1 = inlined_call_operand.vmem [shape: s32[8,1], index: 1, kind: input, shape index: {}]   ;;  %s3146_s2 = inlined_call_operand.vmem [shape: bf16[128,512], index: 2, kind: input, shape index: {}]   ;;  %s3147_s3 = inlined_call_operand.vmem [shape: bf16[128,512], index: 3, kind: input, shape index: {}]   ;;  %s3148_s5 = inlined_call_operand.vmem [shape: bf16[128,512], index: 5, kind: input, shape index: {}]   ;;  %s3149_s6 = inlined_call_operand.vmem [shape: bf16[128,512], index: 6, kind: input, shape index: {}]   ;;  %s3150_s7 = inlined_call_operand.vmem [shape: f32[1,512], index: 7, kind: input, shape index: {}]   ;;  %s3151_s8 = inlined_call_operand.vmem [shape: bf16[128,128], index: 8, kind: input, shape index: {}]   ;;  %s3152_s9 = inlined_call_operand.vmem [shape: f32[1,128], index: 9, kind: input, shape index: {}]   ;;  %s3153_s10 = inlined_call_operand.vmem [shape: f32[8,128], index: 10, kind: output, shape index: {}]   ;;  %s3154_s0 = inlined_call_operand.vmem [shape: bf16[8,8,128], index: 0, kind: input, shape index: {}]   ;;  %s3155_s4 = inlined_call_operand.vmem [shape: f32[1,512], index: 4, kind: input, shape index: {}]  }
   0x1   :  { %v2169_v0 = vld [vmem:[%s3146_s2 + $0xe4] ss:$16 sps:$4 sm:$0xff]   ;;  %314 = vmatprep.mubr.bf16.mxu0 %v2466_v1  ;;  %387 = vmatprep.mubr.bf16.mxu1 %v2466_v1  ;;  %v2171_v2 = vld [vmem:[%s3146_s2 + $0xec] ss:$16 sps:$4 sm:$0xff]   ;;  %v2173_v3 = vld [vmem:[%s3146_s2 + $0xe0] ss:$16 sps:$4 sm:$0xff]  }
   0x2   :  { %282 = vmatprep.subr.bf16.mxu0 %v2169_v0  ;;  %v2174_v4 = vld [vmem:[%s3146_s2 + $0xe8] ss:$16 sps:$4 sm:$0xff]   ;;  %355 = vmatprep.subr.bf16.mxu1 %v2171_v2  ;;  %v2175_v5 = vld [vmem:[%s3146_s2 + $0xc4] ss:$16 sps:$4 sm:$0xff]   ;;  %v2177_v6 = vld [vmem:[%s3146_s2 + $0xcc] ss:$16 sps:$4 sm:$0xff]  }
   0x3   :  { %283 = vmatpush1.bf16.msra.mxu0 %v2173_v3  ;;  %356 = vmatpush1.bf16.msra.mxu1 %v2174_v4  ;;  %v2179_v7 = vld [vmem:[%s3146_s2 + $0xc0] ss:$16 sps:$4 sm:$0xff]   ;;  %v2180_v8 = vld [vmem:[%s3146_s2 + $0xc8] ss:$16 sps:$4 sm:$0xff]   ;;  %v2181_v9 = vld [vmem:[%s3146_s2 + $0xa4] ss:$16 sps:$4 sm:$0xff]  }
   0x4   :  { %284 = vmatprep.subr.bf16.mxu0 %v2175_v5  ;;  %357 = vmatprep.subr.bf16.mxu1 %v2177_v6  ;;  %v2183_v10 = vld [vmem:[%s3146_s2 + $0xac] ss:$16 sps:$4 sm:$0xff]   ;;  %v2185_v11 = vld [vmem:[%s3146_s2 + $0xa0] ss:$16 sps:$4 sm:$0xff]   ;;  %v2186_v12 = vld [vmem:[%s3146_s2 + $0xa8] ss:$16 sps:$4 sm:$0xff]  }
   0x5   :  { %v2187_v13 = vld [vmem:[%s3146_s2 + $0x84] ss:$16 sps:$4 sm:$0xff]   ;;  %v2189_v14 = vld [vmem:[%s3146_s2 + $0x8c] ss:$16 sps:$4 sm:$0xff]   ;;  %v2191_v15 = vld [vmem:[%s3146_s2 + $0x80] ss:$16 sps:$4 sm:$0xff]  }
   0x6   :  { %v2192_v16 = vld [vmem:[%s3146_s2 + $0x88] ss:$16 sps:$4 sm:$0xff]   ;;  %v2193_v17 = vld [vmem:[%s3146_s2 + $0x64] ss:$16 sps:$4 sm:$0xff]   ;;  %v2195_v18 = vld [vmem:[%s3146_s2 + $0x6c] ss:$16 sps:$4 sm:$0xff]  }
   0x7   :  { %285 = vmatpush1.bf16.msra.mxu0 %v2179_v7  ;;  %358 = vmatpush1.bf16.msra.mxu1 %v2180_v8  ;;  %v2197_v19 = vld [vmem:[%s3146_s2 + $0x60] ss:$16 sps:$4 sm:$0xff]   ;;  %v2198_v20 = vld [vmem:[%s3146_s2 + $0x68] ss:$16 sps:$4 sm:$0xff]   ;;  %v2199_v21 = vld [vmem:[%s3146_s2 + $0x44] ss:$16 sps:$4 sm:$0xff]  }
   0x8   :  { %286 = vmatprep.subr.bf16.mxu0 %v2181_v9  ;;  %359 = vmatprep.subr.bf16.mxu1 %v2183_v10  ;;  %v2201_v22 = vld [vmem:[%s3146_s2 + $0x4c] ss:$16 sps:$4 sm:$0xff]   ;;  %v2203_v23 = vld [vmem:[%s3146_s2 + $0x40] ss:$16 sps:$4 sm:$0xff]   ;;  %v2204_v24 = vld [vmem:[%s3146_s2 + $0x48] ss:$16 sps:$4 sm:$0xff]  }
   0x9   :  { %v2205_v25 = vld [vmem:[%s3146_s2 + $0x24] ss:$16 sps:$4 sm:$0xff]   ;;  %v2207_v26 = vld [vmem:[%s3146_s2 + $0x2c] ss:$16 sps:$4 sm:$0xff]   ;;  %v2209_v27 = vld [vmem:[%s3146_s2 + $0x20] ss:$16 sps:$4 sm:$0xff]  }
   0xa   :  { %v2210_v28 = vld [vmem:[%s3146_s2 + $0x28] ss:$16 sps:$4 sm:$0xff]   ;;  %v2211_v29 = vld [vmem:[%s3146_s2 + $0x4] ss:$16 sps:$4 sm:$0xff]   ;;  %v2213_v30 = vld [vmem:[%s3146_s2 + $0xc] ss:$16 sps:$4 sm:$0xff]  }
   0xb   :  { %287 = vmatpush1.bf16.msra.mxu0 %v2185_v11  ;;  %360 = vmatpush1.bf16.msra.mxu1 %v2186_v12  ;;  %v2215_v31 = vld [vmem:[%s3146_s2] ss:$16 sps:$4 sm:$0xff]   ;;  %v2216_v32 = vld [vmem:[%s3146_s2 + $0x8] ss:$16 sps:$4 sm:$0xff]   ;;  %v2642_v38 = vshrl.u32 %v78_v37, 7 }
   0xc   :  { %288 = vmatprep.subr.bf16.mxu0 %v2187_v13  ;;  %361 = vmatprep.subr.bf16.mxu1 %v2189_v14  ;;  %v2217_v33 = vld [vmem:[%s3154_s0] sm:$0xff]   ;;  %v2218_v34 = vld [vmem:[%s3154_s0 + $0x8] sm:$0xff]   ;;  %v2219_v35 = vld [vmem:[%s3154_s0 + $0x10] sm:$0xff]  }
   0xd   :  { %v2220_v36 = vld [vmem:[%s3154_s0 + $0x18] sm:$0xff]   ;;  %v80_v39 = vsub.s32 0, %v2642_v38  ;;  %v88_v40 = vsub.s32 2, %v2642_v38  ;;  %v84_v41 = vsub.s32 1, %v2642_v38  ;;  %v92_v42 = vsub.s32 3, %v2642_v38  ;;  %s2703_s0 = smov 0  }
   0xe   :  { %v76_v43 = vld [vmem:[%s3155_s4] sm:$0xf] }
   0xf   :  { %289 = vmatpush1.bf16.msra.mxu0 %v2191_v15  ;;  %362 = vmatpush1.bf16.msra.mxu1 %v2192_v16  ;;  %v2653_v44 = vrot.slane %v76_v43, %v80_v39  ;;  %v2657_v45 = vrot.slane %v76_v43, %v88_v40  ;;  %v2661_v46 = vrot.slane %v76_v43, %v84_v41 }
  0x10   :  { %290 = vmatprep.subr.bf16.mxu0 %v2193_v17  ;;  %363 = vmatprep.subr.bf16.mxu1 %v2195_v18  ;;  %v2665_v47 = vrot.slane %v76_v43, %v92_v42 }
  0x13   :  { %291 = vmatpush1.bf16.msra.mxu0 %v2197_v19  ;;  %364 = vmatpush1.bf16.msra.mxu1 %v2198_v20 }
  0x14   :  { %292 = vmatprep.subr.bf16.mxu0 %v2199_v21  ;;  %365 = vmatprep.subr.bf16.mxu1 %v2201_v22 }
  0x17   :  { %293 = vmatpush1.bf16.msra.mxu0 %v2203_v23  ;;  %366 = vmatpush1.bf16.msra.mxu1 %v2204_v24 }
  0x18   :  { %294 = vmatprep.subr.bf16.mxu0 %v2205_v25  ;;  %367 = vmatprep.subr.bf16.mxu1 %v2207_v26 }
  0x1b   :  { %295 = vmatpush1.bf16.msra.mxu0 %v2209_v27  ;;  %368 = vmatpush1.bf16.msra.mxu1 %v2210_v28 }
  0x1c   :  { %296 = vmatprep.subr.bf16.mxu0 %v2211_v29  ;;  %369 = vmatprep.subr.bf16.mxu1 %v2213_v30 }
  0x1f   :  { %297 = vmatpush1.bf16.msra.mxu0 %v2215_v31  ;;  %370 = vmatpush1.bf16.msra.mxu1 %v2216_v32 }
  0x22   :  { %315 = vmatmul.mubr.bf16.vlgmr.msra.gmra.mxu0 %v2217_v33  ;;  %388 = vmatmul.mubr.bf16.vlgmr.msra.gmra.mxu1 %v2217_v33 }
  0x23   :  { %324 = vmatprep.mubr.bf16.mxu0 %v2466_v1  ;;  %397 = vmatprep.mubr.bf16.mxu1 %v2466_v1 }
  0x2a   :  { %325 = vmatmul.mubr.bf16.gmra.mxu0 %v2218_v34  ;;  %398 = vmatmul.mubr.bf16.gmra.mxu1 %v2218_v34 }
  0x2b   :  { %334 = vmatprep.mubr.bf16.mxu0 %v2466_v1  ;;  %407 = vmatprep.mubr.bf16.mxu1 %v2466_v1 }
  0x32   :  { %335 = vmatmul.mubr.bf16.gmra.mxu0 %v2219_v35  ;;  %408 = vmatmul.mubr.bf16.gmra.mxu1 %v2219_v35 }
  0x33   :  { %344 = vmatprep.mubr.bf16.mxu0 %v2466_v1  ;;  %417 = vmatprep.mubr.bf16.mxu1 %v2466_v1 }
  0x3a   :  { %345 = vmatmul.mubr.bf16.gmra.mxu0 %v2220_v36  ;;  %418 = vmatmul.mubr.bf16.gmra.mxu1 %v2220_v36 }
  0xe2   :  { %v316_v48 = vpop.f32.mrf.mxu0  ;;  %v389_v49 = vpop.f32.mrf.mxu1 }
  0xe3   :  { %v317_v52 = vadd.f32 %v316_v48, %v2653_v44  ;;  %v390_v53 = vadd.f32 %v389_v49, %v2657_v45 }
  0xe4   :  { %v318_v50 = vpop.f32.mrf.mxu0  ;;  %v391_v51 = vpop.f32.mrf.mxu1 }
  0xe5   :  { %v319_v54 = vadd.f32 %v318_v50, %v2661_v46  ;;  %v392_v55 = vadd.f32 %v391_v51, %v2665_v47 }
  0xe6   :  { %v320_v56 = vpop.f32.mrf.mxu0  ;;  %v393_v57 = vpop.f32.mrf.mxu1 }
  0xe7   :  { %v2045_v58 = vpack.c.bf16 %v319_v54, %v317_v52  ;;  %v2046_v59 = vpack.c.bf16 %v392_v55, %v390_v53  ;;  %v321_v62 = vadd.f32 %v320_v56, %v2653_v44  ;;  %v394_v63 = vadd.f32 %v393_v57, %v2657_v45 }
  0xe8   :  { %v322_v60 = vpop.f32.mrf.mxu0  ;;  %v395_v61 = vpop.f32.mrf.mxu1 }
  0xe9   :  { %524 = vst [vmem:[#allocation3] sm:$0xff] %v2045_v58  ;;  %525 = vst [vmem:[#allocation3 + $0x8] sm:$0xff] %v2046_v59  ;;  %v323_v0 = vadd.f32 %v322_v60, %v2661_v46  ;;  %v396_v2 = vadd.f32 %v395_v61, %v2665_v47 }
  0xea   :  { %v326_v3 = vpop.f32.mrf.mxu0  ;;  %v399_v4 = vpop.f32.mrf.mxu1 }
  0xeb   :  { %v2047_v5 = vpack.c.bf16 %v323_v0, %v321_v62  ;;  %v2048_v6 = vpack.c.bf16 %v396_v2, %v394_v63  ;;  %v327_v9 = vadd.f32 %v326_v3, %v2653_v44  ;;  %v400_v10 = vadd.f32 %v399_v4, %v2657_v45 }
  0xec   :  { %v328_v7 = vpop.f32.mrf.mxu0  ;;  %v401_v8 = vpop.f32.mrf.mxu1 }
  0xed   :  { %526 = vst [vmem:[#allocation3 + $0x10] sm:$0xff] %v2047_v5  ;;  %527 = vst [vmem:[#allocation3 + $0x18] sm:$0xff] %v2048_v6  ;;  %v329_v11 = vadd.f32 %v328_v7, %v2661_v46  ;;  %v402_v12 = vadd.f32 %v401_v8, %v2665_v47 }
  0xee   :  { %v330_v13 = vpop.f32.mrf.mxu0  ;;  %v403_v14 = vpop.f32.mrf.mxu1 }
  0xef   :  { %v2049_v15 = vpack.c.bf16 %v329_v11, %v327_v9  ;;  %v2050_v16 = vpack.c.bf16 %v402_v12, %v400_v10  ;;  %v331_v19 = vadd.f32 %v330_v13, %v2653_v44  ;;  %v404_v20 = vadd.f32 %v403_v14, %v2657_v45 }
  0xf0   :  { %v332_v17 = vpop.f32.mrf.mxu0  ;;  %v405_v18 = vpop.f32.mrf.mxu1  ;;  %v2699_v11 = vmov 0.0   ;;  %v2701_v12 = vmov 0.0  }
  0xf1   :  { %528 = vst [vmem:[#allocation3 + $0x20] sm:$0xff] %v2049_v15  ;;  %529 = vst [vmem:[#allocation3 + $0x28] sm:$0xff] %v2050_v16  ;;  %v333_v21 = vadd.f32 %v332_v17, %v2661_v46  ;;  %v406_v22 = vadd.f32 %v405_v18, %v2665_v47 }
  0xf2   :  { %v336_v23 = vpop.f32.mrf.mxu0  ;;  %v409_v24 = vpop.f32.mrf.mxu1 }
  0xf3   :  { %v2051_v25 = vpack.c.bf16 %v333_v21, %v331_v19  ;;  %v2052_v26 = vpack.c.bf16 %v406_v22, %v404_v20  ;;  %v337_v29 = vadd.f32 %v336_v23, %v2653_v44  ;;  %v410_v30 = vadd.f32 %v409_v24, %v2657_v45 }
  0xf4   :  { %v338_v27 = vpop.f32.mrf.mxu0  ;;  %v411_v28 = vpop.f32.mrf.mxu1 }
  0xf5   :  { %530 = vst [vmem:[#allocation3 + $0x30] sm:$0xff] %v2051_v25  ;;  %531 = vst [vmem:[#allocation3 + $0x38] sm:$0xff] %v2052_v26  ;;  %v339_v31 = vadd.f32 %v338_v27, %v2661_v46  ;;  %v412_v32 = vadd.f32 %v411_v28, %v2665_v47 }
  0xf6   :  { %v340_v33 = vpop.f32.mrf.mxu0  ;;  %v413_v34 = vpop.f32.mrf.mxu1 }
  0xf7   :  { %v2053_v35 = vpack.c.bf16 %v339_v31, %v337_v29  ;;  %v2054_v36 = vpack.c.bf16 %v412_v32, %v410_v30  ;;  %v341_v48 = vadd.f32 %v340_v33, %v2653_v44  ;;  %v414_v49 = vadd.f32 %v413_v34, %v2657_v45 }
  0xf8   :  { %v342_v37 = vpop.f32.mrf.mxu0  ;;  %v415_v43 = vpop.f32.mrf.mxu1 }
  0xf9   :  { %532 = vst [vmem:[#allocation3 + $0x40] sm:$0xff] %v2053_v35  ;;  %533 = vst [vmem:[#allocation3 + $0x48] sm:$0xff] %v2054_v36  ;;  %v343_v50 = vadd.f32 %v342_v37, %v2661_v46  ;;  %v416_v51 = vadd.f32 %v415_v43, %v2665_v47 }
  0xfa   :  { %v346_v52 = vpop.f32.mrf.mxu0  ;;  %v419_v53 = vpop.f32.mrf.mxu1 }
  0xfb   :  { %v2055_v54 = vpack.c.bf16 %v343_v50, %v341_v48  ;;  %v2056_v55 = vpack.c.bf16 %v416_v51, %v414_v49  ;;  %v347_v58 = vadd.f32 %v346_v52, %v2653_v44  ;;  %v420_v59 = vadd.f32 %v419_v53, %v2657_v45 }
  0xfc   :  { %v348_v56 = vpop.f32.mrf.mxu0  ;;  %v421_v57 = vpop.f32.mrf.mxu1 }
  0xfd   :  { %534 = vst [vmem:[#allocation3 + $0x50] sm:$0xff] %v2055_v54  ;;  %535 = vst [vmem:[#allocation3 + $0x58] sm:$0xff] %v2056_v55  ;;  %v349_v60 = vadd.f32 %v348_v56, %v2661_v46  ;;  %v422_v61 = vadd.f32 %v421_v57, %v2665_v47 }
  0xfe   :  { %v350_v62 = vpop.f32.mrf.mxu0  ;;  %v423_v63 = vpop.f32.mrf.mxu1 }
  0xff   :  { %v2057_v0 = vpack.c.bf16 %v349_v60, %v347_v58  ;;  %v2058_v2 = vpack.c.bf16 %v422_v61, %v420_v59  ;;  %v351_v5 = vadd.f32 %v350_v62, %v2653_v44  ;;  %v424_v6 = vadd.f32 %v423_v63, %v2657_v45 }
 0x100   :  { %v352_v3 = vpop.f32.mrf.mxu0  ;;  %v425_v4 = vpop.f32.mrf.mxu1 }
 0x101   :  { %536 = vst [vmem:[#allocation3 + $0x60] sm:$0xff] %v2057_v0  ;;  %537 = vst [vmem:[#allocation3 + $0x68] sm:$0xff] %v2058_v2  ;;  %v353_v7 = vadd.f32 %v352_v3, %v2661_v46  ;;  %v426_v8 = vadd.f32 %v425_v4, %v2665_v47 }
 0x103   :  { %v2059_v9 = vpack.c.bf16 %v353_v7, %v351_v5  ;;  %v2060_v10 = vpack.c.bf16 %v426_v8, %v424_v6 }
 0x105   :  { %538 = vst [vmem:[#allocation3 + $0x70] sm:$0xff] %v2059_v9  ;;  %539 = vst [vmem:[#allocation3 + $0x78] sm:$0xff] %v2060_v10 }
 0x106 LB: > { %v2221_v44 = vld [vmem:[%s3147_s3 + $0xe4] ss:$16 sps:$4 sm:$0xff]   ;;  %v2223_v45 = vld [vmem:[%s3147_s3 + $0xe0] ss:$16 sps:$4 sm:$0xff]   ;;  %v2467_v46 = vmov 0   ;;  %v560_v50 = vpack.c.bf16 %v2444_v12, %v2444_v12  ;;  %s1907_s24 = sshll.u32 %s2448_s0, 3  ;;  %s2448_s0 = sphi %s2703_s0, %s545_s0   ;;  %v2444_v12 = vphi %v2701_v12, %v862_v12   ;;  %v2440_v11 = vphi %v2699_v11, %v860_v11  }
 0x107   : > { %785 = vmatprep.mubr.bf16.mxu0 %v2467_v46  ;;  %826 = vmatprep.mubr.bf16.mxu1 %v2467_v46  ;;  %v2224_v47 = vld [vmem:[%s3147_s3 + $0xc4] ss:$16 sps:$4 sm:$0xff]   ;;  %v2226_v13 = vld [vmem:[%s3147_s3 + $0xc0] ss:$16 sps:$4 sm:$0xff]   ;;  %v2232_v15 = vld [vmem:[%s3147_s3 + $0xec] ss:$16 sps:$4 sm:$0xff]  }
 0x108   : > { %753 = vmatprep.subr.bf16.mxu0 %v2221_v44  ;;  %v2227_v14 = vld [vmem:[%s3147_s3 + $0xa4] ss:$16 sps:$4 sm:$0xff]   ;;  %v2235_v16 = vld [vmem:[%s3147_s3 + $0xe8] ss:$16 sps:$4 sm:$0xff]   ;;  %v2229_v17 = vld [vmem:[%s3147_s3 + $0xa0] ss:$16 sps:$4 sm:$0xff]   ;;  %794 = vmatprep.subr.bf16.mxu1 %v2232_v15 }
 0x109   : > { %754 = vmatpush1.bf16.msra.mxu0 %v2223_v45  ;;  %v2230_v18 = vld [vmem:[%s3147_s3 + $0x84] ss:$16 sps:$4 sm:$0xff]   ;;  %795 = vmatpush1.bf16.msra.mxu1 %v2235_v16  ;;  %v2238_v19 = vld [vmem:[%s3147_s3 + $0xcc] ss:$16 sps:$4 sm:$0xff]   ;;  %v2241_v20 = vld [vmem:[%s3147_s3 + $0xc8] ss:$16 sps:$4 sm:$0xff]  }
 0x10a   : > { %755 = vmatprep.subr.bf16.mxu0 %v2224_v47  ;;  %796 = vmatprep.subr.bf16.mxu1 %v2238_v19  ;;  %v2234_v21 = vld [vmem:[%s3147_s3 + $0x80] ss:$16 sps:$4 sm:$0xff]   ;;  %v2236_v22 = vld [vmem:[%s3147_s3 + $0x64] ss:$16 sps:$4 sm:$0xff]   ;;  %v2244_v23 = vld [vmem:[%s3147_s3 + $0xac] ss:$16 sps:$4 sm:$0xff]  }
 0x10b   : > { %v2247_v24 = vld [vmem:[%s3147_s3 + $0xa8] ss:$16 sps:$4 sm:$0xff]   ;;  %v2250_v25 = vld [vmem:[%s3147_s3 + $0x8c] ss:$16 sps:$4 sm:$0xff]   ;;  %v2240_v26 = vld [vmem:[%s3147_s3 + $0x60] ss:$16 sps:$4 sm:$0xff]  }
 0x10c   : > { %v2242_v27 = vld [vmem:[%s3147_s3 + $0x44] ss:$16 sps:$4 sm:$0xff]   ;;  %v2253_v28 = vld [vmem:[%s3147_s3 + $0x88] ss:$16 sps:$4 sm:$0xff]   ;;  %v2256_v29 = vld [vmem:[%s3147_s3 + $0x6c] ss:$16 sps:$4 sm:$0xff]  }
 0x10d   : > { %756 = vmatpush1.bf16.msra.mxu0 %v2226_v13  ;;  %797 = vmatpush1.bf16.msra.mxu1 %v2241_v20  ;;  %v2246_v30 = vld [vmem:[%s3147_s3 + $0x40] ss:$16 sps:$4 sm:$0xff]   ;;  %v2248_v31 = vld [vmem:[%s3147_s3 + $0x24] ss:$16 sps:$4 sm:$0xff]   ;;  %v2259_v32 = vld [vmem:[%s3147_s3 + $0x68] ss:$16 sps:$4 sm:$0xff]  }
 0x10e   : > { %757 = vmatprep.subr.bf16.mxu0 %v2227_v14  ;;  %798 = vmatprep.subr.bf16.mxu1 %v2244_v23  ;;  %v2260_v33 = vld [vmem:[%s3147_s3 + $0x4c] ss:$16 sps:$4 sm:$0xff]   ;;  %v2252_v34 = vld [vmem:[%s3147_s3 + $0x20] ss:$16 sps:$4 sm:$0xff]   ;;  %v2254_v35 = vld [vmem:[%s3147_s3 + $0x4] ss:$16 sps:$4 sm:$0xff]  }
 0x10f   : > { %v2262_v36 = vld [vmem:[%s3147_s3 + $0x48] ss:$16 sps:$4 sm:$0xff]   ;;  %v2263_v37 = vld [vmem:[%s3147_s3 + $0x2c] ss:$16 sps:$4 sm:$0xff]   ;;  %v2258_v43 = vld [vmem:[%s3147_s3] ss:$16 sps:$4 sm:$0xff]  }
 0x110   : > { %v2265_v48 = vld [vmem:[%s3147_s3 + $0x28] ss:$16 sps:$4 sm:$0xff]   ;;  %v2266_v49 = vld [vmem:[%s3147_s3 + $0xc] ss:$16 sps:$4 sm:$0xff]   ;;  %s549_s25 = sshra.s32 %s1907_s24, 3  ;;  %s1945_s27 = sshll.u32 %s2448_s0, 2 }
 0x111   : > { %758 = vmatpush1.bf16.msra.mxu0 %v2229_v17  ;;  %799 = vmatpush1.bf16.msra.mxu1 %v2247_v24  ;;  %v2268_v51 = vld [vmem:[%s3147_s3 + $0x8] ss:$16 sps:$4 sm:$0xff]   ;;  %s2061_s4 = sshll.u32 %s549_s25, 4  ;;  %s866_s28 = scalar_lea.vmem [#allocation2], %s1945_s27 }
 0x112   : > { %759 = vmatprep.subr.bf16.mxu0 %v2230_v18  ;;  %800 = vmatprep.subr.bf16.mxu1 %v2250_v25  ;;  %s553_s26 = scalar_lea.vmem [#allocation3], %s2061_s4  ;;  %s545_s0 = sadd.s32 1, %s2448_s0  }
 0x113   : > { %v554_v52 = vld [vmem:[%s553_s26] sm:$0xff]  ;;  %v555_v62 = vld [vmem:[%s553_s26 + $0x8] sm:$0xff]  ;;  %p542_p0 = scmp.ge.s32.totalorder %s545_s0, 8  }
 0x114   : > { %v556_v53 = vunpack.c.l.bf16 %v554_v52  ;;  %v557_v54 = vunpack.c.h.bf16 %v554_v52  ;;  %v559_v3 = vunpack.c.h.bf16 %v555_v62  ;;  %v558_v5 = vunpack.c.l.bf16 %v555_v62  ;;  %v2289_v23 = vld [vmem:[%s3148_s5 + $0xe0] ss:$16 sps:$4 sm:$0xff] (%p542_p0)   ;;  %v2291_v24 = vld [vmem:[%s3148_s5 + $0xc4] ss:$16 sps:$4 sm:$0xff] (%p542_p0)   ;;  %v2293_v25 = vld [vmem:[%s3148_s5 + $0xcc] ss:$16 sps:$4 sm:$0xff] (%p542_p0)  }
 0x115   : > { %760 = vmatpush1.bf16.msra.mxu0 %v2234_v21  ;;  %801 = vmatpush1.bf16.msra.mxu1 %v2253_v28  ;;  %v2285_v21 = vld [vmem:[%s3148_s5 + $0xe4] ss:$16 sps:$4 sm:$0xff] (%p542_p0)   ;;  %v2320_v52 = vld [vmem:[%s3148_s5 + $0x48] ss:$16 sps:$4 sm:$0xff] (%p542_p0)  }
 0x116   : > { %761 = vmatprep.subr.bf16.mxu0 %v2236_v22  ;;  %802 = vmatprep.subr.bf16.mxu1 %v2256_v29  ;;  %v2287_v22 = vld [vmem:[%s3148_s5 + $0xec] ss:$16 sps:$4 sm:$0xff] (%p542_p0)   ;;  %v2297_v28 = vld [vmem:[%s3148_s5 + $0xa4] ss:$16 sps:$4 sm:$0xff] (%p542_p0)  }
 0x117   :  { %v2299_v29 = vld [vmem:[%s3148_s5 + $0xac] ss:$16 sps:$4 sm:$0xff] (%p542_p0)  }
 0x119   : > { %762 = vmatpush1.bf16.msra.mxu0 %v2240_v26  ;;  %803 = vmatpush1.bf16.msra.mxu1 %v2259_v32  ;;  %v2295_v26 = vld [vmem:[%s3148_s5 + $0xc0] ss:$16 sps:$4 sm:$0xff] (%p542_p0)   ;;  %v2303_v32 = vld [vmem:[%s3148_s5 + $0x84] ss:$16 sps:$4 sm:$0xff] (%p542_p0)  }
 0x11a   : > { %763 = vmatprep.subr.bf16.mxu0 %v2242_v27  ;;  %804 = vmatprep.subr.bf16.mxu1 %v2260_v33  ;;  %v2296_v27 = vld [vmem:[%s3148_s5 + $0xc8] ss:$16 sps:$4 sm:$0xff] (%p542_p0)   ;;  %v2305_v33 = vld [vmem:[%s3148_s5 + $0x8c] ss:$16 sps:$4 sm:$0xff] (%p542_p0)  }
 0x11d   : > { %764 = vmatpush1.bf16.msra.mxu0 %v2246_v30  ;;  %805 = vmatpush1.bf16.msra.mxu1 %v2262_v36  ;;  %v2301_v30 = vld [vmem:[%s3148_s5 + $0xa0] ss:$16 sps:$4 sm:$0xff] (%p542_p0)   ;;  %v2309_v36 = vld [vmem:[%s3148_s5 + $0x64] ss:$16 sps:$4 sm:$0xff] (%p542_p0)  }
 0x11e   : > { %765 = vmatprep.subr.bf16.mxu0 %v2248_v31  ;;  %806 = vmatprep.subr.bf16.mxu1 %v2263_v37  ;;  %v2302_v31 = vld [vmem:[%s3148_s5 + $0xa8] ss:$16 sps:$4 sm:$0xff] (%p542_p0)   ;;  %v2311_v37 = vld [vmem:[%s3148_s5 + $0x6c] ss:$16 sps:$4 sm:$0xff] (%p542_p0)  }
 0x121   : > { %766 = vmatpush1.bf16.msra.mxu0 %v2252_v34  ;;  %807 = vmatpush1.bf16.msra.mxu1 %v2265_v48  ;;  %v2307_v34 = vld [vmem:[%s3148_s5 + $0x80] ss:$16 sps:$4 sm:$0xff] (%p542_p0)   ;;  %v2314_v48 = vld [vmem:[%s3148_s5 + $0x68] ss:$16 sps:$4 sm:$0xff] (%p542_p0)  }
 0x122   : > { %767 = vmatprep.subr.bf16.mxu0 %v2254_v35  ;;  %808 = vmatprep.subr.bf16.mxu1 %v2266_v49  ;;  %v2308_v35 = vld [vmem:[%s3148_s5 + $0x88] ss:$16 sps:$4 sm:$0xff] (%p542_p0)   ;;  %v2315_v49 = vld [vmem:[%s3148_s5 + $0x44] ss:$16 sps:$4 sm:$0xff] (%p542_p0)  }
 0x125   : > { %768 = vmatpush1.bf16.msra.mxu0 %v2258_v43  ;;  %809 = vmatpush1.bf16.msra.mxu1 %v2268_v51  ;;  %v2313_v43 = vld [vmem:[%s3148_s5 + $0x60] ss:$16 sps:$4 sm:$0xff] (%p542_p0)  }
 0x126   :  { %1114 = vmatprep.subr.bf16.mxu0 (%p542_p0), %v2285_v21  ;;  %1187 = vmatprep.subr.bf16.mxu1 (%p542_p0), %v2287_v22  ;;  %v2319_v51 = vld [vmem:[%s3148_s5 + $0x40] ss:$16 sps:$4 sm:$0xff] (%p542_p0)  }
 0x128   : > { %786 = vmatmul.mubr.bf16.vlgmr.msra.gmra.mxu0 %v560_v50  ;;  %827 = vmatmul.mubr.bf16.vlgmr.msra.gmra.mxu1 %v560_v50  ;;  %v2317_v50 = vld [vmem:[%s3148_s5 + $0x4c] ss:$16 sps:$4 sm:$0xff] (%p542_p0)  }
 0x129   :  { %1146 = vmatprep.mubr.bf16.mxu0 (%p542_p0), %v2466_v1  ;;  %1219 = vmatprep.mubr.bf16.mxu1 (%p542_p0), %v2466_v1 }
 0x12a   :  { %1115 = vmatpush1.bf16.msra.mxu0 (%p542_p0), %v2289_v23 }
 0x12b   :  { %1116 = vmatprep.subr.bf16.mxu0 (%p542_p0), %v2291_v24 }
 0x12e   :  { %1117 = vmatpush1.bf16.msra.mxu0 (%p542_p0), %v2295_v26 }
 0x12f   :  { %1118 = vmatprep.subr.bf16.mxu0 (%p542_p0), %v2297_v28 }
 0x132   :  { %1119 = vmatpush1.bf16.msra.mxu0 (%p542_p0), %v2301_v30 }
 0x133   :  { %1120 = vmatprep.subr.bf16.mxu0 (%p542_p0), %v2303_v32 }
 0x136   :  { %1121 = vmatpush1.bf16.msra.mxu0 (%p542_p0), %v2307_v34 }
 0x137   :  { %1122 = vmatprep.subr.bf16.mxu0 (%p542_p0), %v2309_v36 }
 0x13a   :  { %1123 = vmatpush1.bf16.msra.mxu0 (%p542_p0), %v2313_v43 }
 0x13b   :  { %1124 = vmatprep.subr.bf16.mxu0 (%p542_p0), %v2315_v49 }
 0x13e   :  { %1125 = vmatpush1.bf16.msra.mxu0 (%p542_p0), %v2319_v51 }
 0x1e8   : > { %v787_v55 = vpop.f32.mrf.mxu0  ;;  %v828_v63 = vpop.f32.mrf.mxu1 }
 0x1e9   : > { %v835_v56 = vadd.f32 %v787_v55, %v556_v53  ;;  %v837_v8 = vadd.f32 %v828_v63, %v558_v5  ;;  %v2321_v53 = vld [vmem:[%s3148_s5 + $0x24] ss:$16 sps:$4 sm:$0xff] (%p542_p0)   ;;  %v2325_v55 = vld [vmem:[%s3148_s5 + $0x20] ss:$16 sps:$4 sm:$0xff] (%p542_p0)  }
 0x1ea   : > { %v789_v57 = vpop.f32.mrf.mxu0  ;;  %v830_v2 = vpop.f32.mrf.mxu1  ;;  %1126 = vmatprep.subr.bf16.mxu0 (%p542_p0), %v2321_v53 }
 0x1eb   : > { %v1942_v58 = vmul.f32 -1.442695, %v835_v56  ;;  %v836_v59 = vadd.f32 %v789_v57, %v557_v54  ;;  %v838_v7 = vadd.f32 %v830_v2, %v559_v3  ;;  %v2323_v54 = vld [vmem:[%s3148_s5 + $0x2c] ss:$16 sps:$4 sm:$0xff] (%p542_p0)   ;;  %v2326_v56 = vld [vmem:[%s3148_s5 + $0x28] ss:$16 sps:$4 sm:$0xff] (%p542_p0)   ;;  %1127 = vmatpush1.bf16.msra.mxu0 (%p542_p0), %v2325_v55 }
 0x1ec   : > { %v791_v60 = vpop.f32.mrf.mxu0  ;;  %v832_v4 = vpop.f32.mrf.mxu1  ;;  %v2327_v57 = vld [vmem:[%s3148_s5 + $0x4] ss:$16 sps:$4 sm:$0xff] (%p542_p0)   ;;  %v908_v2 = vld [vmem:[%s3150_s7] sm:$0xf] (%p542_p0)  ;;  %s2983_s7 = smov (%p542_p0), 0  }
 0x1ed   : > { %2269 = vpow2.f32 %v1942_v58  ;;  %v1943_v61 = vmul.f32 -1.442695, %v836_v59  ;;  %v1944_v9 = vmul.f32 -1.442695, %v838_v7  ;;  %v2329_v58 = vld [vmem:[%s3148_s5 + $0xc] ss:$16 sps:$4 sm:$0xff] (%p542_p0)   ;;  %1128 = vmatprep.subr.bf16.mxu0 (%p542_p0), %v2327_v57  ;;  %v2931_v3 = vrot.slane (%p542_p0), %v908_v2, %v80_v39 }
 0x1ee   : > { %v792_v0 = vpop.f32.mrf.mxu0  ;;  %v833_v6 = vpop.f32.mrf.mxu1  ;;  %v2331_v59 = vld [vmem:[%s3148_s5] ss:$16 sps:$4 sm:$0xff] (%p542_p0)   ;;  %v2332_v60 = vld [vmem:[%s3148_s5 + $0x8] ss:$16 sps:$4 sm:$0xff] (%p542_p0)   ;;  %v2935_v4 = vrot.slane (%p542_p0), %v908_v2, %v88_v40  ;;  %v2939_v5 = vrot.slane (%p542_p0), %v908_v2, %v84_v41 }
 0x1ef   : > { %2271 = vpow2.f32 %v1943_v61  ;;  %1129 = vmatpush1.bf16.msra.mxu0 (%p542_p0), %v2331_v59 }
 0x1f0   : > { %2273 = vtanh.f32 %v837_v8 }
 0x1f1   : > { %2275 = vpow2.f32 %v1944_v9 }
 0x1fa   : > { %v2270_v10 = vpop.eup %2269 }
 0x1fb   : > { %v842_v12 = vadd.f32 1.0, %v2270_v10 }
 0x1fc   : > { %v2272_v44 = vpop.eup %2271 }
 0x1fd   : > { %2277 = vrcp.f32 %v842_v12  ;;  %v848_v45 = vadd.f32 1.0, %v2272_v44  ;;  %v2274_v46 = vpop.eup %2273 }
 0x1fe   : > { %v2276_v47 = vpop.eup %2275 }
 0x1ff   : > { %2279 = vrcp.f32 %v848_v45  ;;  %v855_v15 = vadd.f32 1.0, %v2276_v47 }
 0x201   : > { %2281 = vrcp.f32 %v855_v15 }
 0x20a   : > { %v2278_v13 = vpop.eup %2277 }
 0x20b   : > { %v859_v17 = vmul.f32 %v2278_v13, %v2274_v46 }
 0x20c   : > { %v2280_v14 = vpop.eup %2279 }
 0x20d   : > { %v858_v16 = vmul.f32 %v2440_v11, %v2280_v14 }
 0x20e   : > { %v2282_v18 = vpop.eup %2281 }
 0x20f   : > { %v860_v11 = vadd.f32 %v859_v17, %v858_v16  }
 0x211   : > { %2283 = vtanh.f32 %v860_v11  ;;  %v2290_v11 = vld [vmem:[%s3148_s5 + $0xe8] ss:$16 sps:$4 sm:$0xff] (%p542_p0)  }
 0x212   :  { %1188 = vmatpush1.bf16.msra.mxu1 (%p542_p0), %v2290_v11 }
 0x213   :  { %1189 = vmatprep.subr.bf16.mxu1 (%p542_p0), %v2293_v25 }
 0x216   :  { %1190 = vmatpush1.bf16.msra.mxu1 (%p542_p0), %v2296_v27 }
 0x217   :  { %1191 = vmatprep.subr.bf16.mxu1 (%p542_p0), %v2299_v29 }
 0x21a   :  { %1192 = vmatpush1.bf16.msra.mxu1 (%p542_p0), %v2302_v31 }
 0x21b   :  { %1193 = vmatprep.subr.bf16.mxu1 (%p542_p0), %v2305_v33 }
 0x21e   : > { %v2284_v19 = vpop.eup %2283  ;;  %1194 = vmatpush1.bf16.msra.mxu1 (%p542_p0), %v2308_v35 }
 0x21f   : > { %v862_v12 = vmul.f32 %v2284_v19, %v2282_v18   ;;  %544 = sbr.rel (!%p542_p0) target bundleno = 262 (0x106), region = 77  ;;  %1195 = vmatprep.subr.bf16.mxu1 (%p542_p0), %v2311_v37 }
 0x221   : > { %v864_v20 = vpack.c.bf16 %v862_v12, %v862_v12 }
 0x222   :  { %1196 = vmatpush1.bf16.msra.mxu1 (%p542_p0), %v2314_v48 }
 0x223   : > { %867 = vst [vmem:[%s866_s28] sm:$0xf] %v864_v20  ;;  %1197 = vmatprep.subr.bf16.mxu1 (%p542_p0), %v2317_v50 }
 0x226   :  { %1198 = vmatpush1.bf16.msra.mxu1 %v2320_v52 }
 0x227   :  { %1199 = vmatprep.subr.bf16.mxu1 %v2323_v54 }
 0x22a   :  { %1200 = vmatpush1.bf16.msra.mxu1 %v2326_v56  ;;  %v2333_v61 = vld [vmem:[#allocation2] sm:$0xff]   ;;  %v2334_v62 = vld [vmem:[#allocation2 + $0x8] sm:$0xff]   ;;  %v2335_v63 = vld [vmem:[#allocation2 + $0x10] sm:$0xff]  }
 0x22b   :  { %1201 = vmatprep.subr.bf16.mxu1 %v2329_v58  ;;  %1147 = vmatmul.mubr.bf16.vlgmr.msra.gmra.mxu0 %v2333_v61  ;;  %v2336_v0 = vld [vmem:[#allocation2 + $0x18] sm:$0xff]  }
 0x22c   :  { %1156 = vmatprep.mubr.bf16.mxu0 %v2466_v1 }
 0x22e   :  { %1202 = vmatpush1.bf16.msra.mxu1 %v2332_v60 }
 0x231   :  { %1220 = vmatmul.mubr.bf16.vlgmr.msra.gmra.mxu1 %v2333_v61 }
 0x232   :  { %1229 = vmatprep.mubr.bf16.mxu1 %v2466_v1 }
 0x233   :  { %1157 = vmatmul.mubr.bf16.gmra.mxu0 %v2334_v62 }
 0x234   :  { %1166 = vmatprep.mubr.bf16.mxu0 %v2466_v1 }
 0x239   :  { %1230 = vmatmul.mubr.bf16.gmra.mxu1 %v2334_v62 }
 0x23a   :  { %1239 = vmatprep.mubr.bf16.mxu1 %v2466_v1 }
 0x23b   :  { %1167 = vmatmul.mubr.bf16.gmra.mxu0 %v2335_v63 }
 0x23c   :  { %1176 = vmatprep.mubr.bf16.mxu0 %v2466_v1 }
 0x241   :  { %1240 = vmatmul.mubr.bf16.gmra.mxu1 %v2335_v63 }
 0x242   :  { %1249 = vmatprep.mubr.bf16.mxu1 %v2466_v1  ;;  %v2943_v1 = vrot.slane %v908_v2, %v92_v42 }
 0x243   :  { %1177 = vmatmul.mubr.bf16.gmra.mxu0 %v2336_v0 }
 0x249   :  { %1250 = vmatmul.mubr.bf16.gmra.mxu1 %v2336_v0 }
 0x2eb   :  { %v1148_v6 = vpop.f32.mrf.mxu0 }
 0x2ec   :  { %v1149_v10 = vadd.f32 %v1148_v6, %v2931_v3 }
 0x2ed   :  { %v1150_v8 = vpop.f32.mrf.mxu0 }
 0x2ee   :  { %v1151_v12 = vadd.f32 %v1150_v8, %v2939_v5 }
 0x2ef   :  { %v1152_v44 = vpop.f32.mrf.mxu0 }
 0x2f0   :  { %v2062_v41 = vpack.c.bf16 %v1151_v12, %v1149_v10  ;;  %v1153_v42 = vadd.f32 %v1152_v44, %v2931_v3 }
 0x2f1   :  { %v1221_v7 = vpop.f32.mrf.mxu1  ;;  %v1154_v47 = vpop.f32.mrf.mxu0 }
 0x2f2   :  { %v1222_v39 = vadd.f32 %v1221_v7, %v2935_v4  ;;  %1356 = vst [vmem:[#allocation3] sm:$0xff] %v2062_v41  ;;  %v1155_v14 = vadd.f32 %v1154_v47, %v2939_v5 }
 0x2f3   :  { %v1223_v9 = vpop.f32.mrf.mxu1  ;;  %v1158_v16 = vpop.f32.mrf.mxu0 }
 0x2f4   :  { %v1224_v40 = vadd.f32 %v1223_v9, %v2943_v1  ;;  %v2064_v18 = vpack.c.bf16 %v1155_v14, %v1153_v42  ;;  %v1159_v22 = vadd.f32 %v1158_v16, %v2931_v3 }
 0x2f5   :  { %v1225_v45 = vpop.f32.mrf.mxu1  ;;  %v1160_v20 = vpop.f32.mrf.mxu0 }
 0x2f6   :  { %v2063_v46 = vpack.c.bf16 %v1224_v40, %v1222_v39  ;;  %v1226_v13 = vadd.f32 %v1225_v45, %v2935_v4  ;;  %1358 = vst [vmem:[#allocation3 + $0x10] sm:$0xff] %v2064_v18  ;;  %v1161_v11 = vadd.f32 %v1160_v20, %v2939_v5  ;;  %v2977_v18 = vmov 0.0  }
 0x2f7   :  { %v1227_v38 = vpop.f32.mrf.mxu1  ;;  %v1162_v25 = vpop.f32.mrf.mxu0  ;;  %v2981_v20 = vmov 0.0  }
 0x2f8   :  { %1357 = vst [vmem:[#allocation3 + $0x8] sm:$0xff] %v2063_v46  ;;  %v1228_v15 = vadd.f32 %v1227_v38, %v2943_v1  ;;  %v2066_v27 = vpack.c.bf16 %v1161_v11, %v1159_v22  ;;  %v1163_v31 = vadd.f32 %v1162_v25, %v2931_v3 }
 0x2f9   :  { %v1231_v17 = vpop.f32.mrf.mxu1  ;;  %v1164_v29 = vpop.f32.mrf.mxu0 }
 0x2fa   :  { %v2065_v19 = vpack.c.bf16 %v1228_v15, %v1226_v13  ;;  %v1232_v23 = vadd.f32 %v1231_v17, %v2935_v4  ;;  %1360 = vst [vmem:[#allocation3 + $0x20] sm:$0xff] %v2066_v27  ;;  %v1165_v33 = vadd.f32 %v1164_v29, %v2939_v5 }
 0x2fb   :  { %v1233_v21 = vpop.f32.mrf.mxu1  ;;  %v1168_v35 = vpop.f32.mrf.mxu0 }
 0x2fc   :  { %1359 = vst [vmem:[#allocation3 + $0x18] sm:$0xff] %v2065_v19  ;;  %v1234_v24 = vadd.f32 %v1233_v21, %v2943_v1  ;;  %v2068_v37 = vpack.c.bf16 %v1165_v33, %v1163_v31  ;;  %v1169_v50 = vadd.f32 %v1168_v35, %v2931_v3  ;;  %v2979_v19 = vmov 0.0  }
 0x2fd   :  { %v1235_v26 = vpop.f32.mrf.mxu1  ;;  %v1170_v48 = vpop.f32.mrf.mxu0 }
 0x2fe   :  { %v2067_v28 = vpack.c.bf16 %v1234_v24, %v1232_v23  ;;  %v1236_v32 = vadd.f32 %v1235_v26, %v2935_v4  ;;  %1362 = vst [vmem:[#allocation3 + $0x30] sm:$0xff] %v2068_v37  ;;  %v1171_v52 = vadd.f32 %v1170_v48, %v2939_v5 }
 0x2ff   :  { %v1237_v30 = vpop.f32.mrf.mxu1  ;;  %v1172_v54 = vpop.f32.mrf.mxu0 }
 0x300   :  { %1361 = vst [vmem:[#allocation3 + $0x28] sm:$0xff] %v2067_v28  ;;  %v1238_v34 = vadd.f32 %v1237_v30, %v2943_v1  ;;  %v2070_v56 = vpack.c.bf16 %v1171_v52, %v1169_v50  ;;  %v1173_v60 = vadd.f32 %v1172_v54, %v2931_v3 }
 0x301   :  { %v1241_v36 = vpop.f32.mrf.mxu1  ;;  %v1174_v58 = vpop.f32.mrf.mxu0 }
 0x302   :  { %v2069_v43 = vpack.c.bf16 %v1238_v34, %v1236_v32  ;;  %v1242_v51 = vadd.f32 %v1241_v36, %v2935_v4  ;;  %1364 = vst [vmem:[#allocation3 + $0x40] sm:$0xff] %v2070_v56  ;;  %v1175_v62 = vadd.f32 %v1174_v58, %v2939_v5 }
 0x303   :  { %v1243_v49 = vpop.f32.mrf.mxu1  ;;  %v1178_v0 = vpop.f32.mrf.mxu0 }
 0x304   :  { %1363 = vst [vmem:[#allocation3 + $0x38] sm:$0xff] %v2069_v43  ;;  %v1244_v53 = vadd.f32 %v1243_v49, %v2943_v1  ;;  %v2072_v6 = vpack.c.bf16 %v1175_v62, %v1173_v60  ;;  %v1179_v10 = vadd.f32 %v1178_v0, %v2931_v3 }
 0x305   :  { %v1245_v55 = vpop.f32.mrf.mxu1  ;;  %v1180_v8 = vpop.f32.mrf.mxu0 }
 0x306   :  { %v2071_v57 = vpack.c.bf16 %v1244_v53, %v1242_v51  ;;  %v1246_v61 = vadd.f32 %v1245_v55, %v2935_v4  ;;  %1366 = vst [vmem:[#allocation3 + $0x50] sm:$0xff] %v2072_v6  ;;  %v1181_v12 = vadd.f32 %v1180_v8, %v2939_v5 }
 0x307   :  { %v1247_v59 = vpop.f32.mrf.mxu1  ;;  %v1182_v44 = vpop.f32.mrf.mxu0 }
 0x308   :  { %1365 = vst [vmem:[#allocation3 + $0x48] sm:$0xff] %v2071_v57  ;;  %v1248_v63 = vadd.f32 %v1247_v59, %v2943_v1  ;;  %v2074_v41 = vpack.c.bf16 %v1181_v12, %v1179_v10  ;;  %v1183_v42 = vadd.f32 %v1182_v44, %v2931_v3 }
 0x309   :  { %v1251_v2 = vpop.f32.mrf.mxu1  ;;  %v1184_v47 = vpop.f32.mrf.mxu0 }
 0x30a   :  { %v2073_v7 = vpack.c.bf16 %v1248_v63, %v1246_v61  ;;  %v1252_v39 = vadd.f32 %v1251_v2, %v2935_v4  ;;  %1368 = vst [vmem:[#allocation3 + $0x60] sm:$0xff] %v2074_v41  ;;  %v1185_v14 = vadd.f32 %v1184_v47, %v2939_v5 }
 0x30b   :  { %v1253_v9 = vpop.f32.mrf.mxu1 }
 0x30c   :  { %1367 = vst [vmem:[#allocation3 + $0x58] sm:$0xff] %v2073_v7  ;;  %v1254_v40 = vadd.f32 %v1253_v9, %v2943_v1  ;;  %v2076_v16 = vpack.c.bf16 %v1185_v14, %v1183_v42 }
 0x30d   :  { %v1255_v45 = vpop.f32.mrf.mxu1 }
 0x30e   :  { %v2075_v46 = vpack.c.bf16 %v1254_v40, %v1252_v39  ;;  %v1256_v13 = vadd.f32 %v1255_v45, %v2935_v4  ;;  %1370 = vst [vmem:[#allocation3 + $0x70] sm:$0xff] %v2076_v16 }
 0x30f   :  { %v1257_v38 = vpop.f32.mrf.mxu1 }
 0x310   :  { %1369 = vst [vmem:[#allocation3 + $0x68] sm:$0xff] %v2075_v46  ;;  %v1258_v15 = vadd.f32 %v1257_v38, %v2943_v1 }
 0x312   :  { %v2077_v17 = vpack.c.bf16 %v1258_v15, %v1256_v13 }
 0x314   :  { %1371 = vst [vmem:[#allocation3 + $0x78] sm:$0xff] %v2077_v17 }
 0x315 LB: > { %v2338_v3 = vld [vmem:[%s3149_s6 + $0xe4] ss:$16 sps:$4 sm:$0xff]   ;;  %v2340_v4 = vld [vmem:[%s3149_s6 + $0xe0] ss:$16 sps:$4 sm:$0xff]   ;;  %v2468_v5 = vmov 0   ;;  %s3055_s15 = sadd.s32 1, %s2464_s7   ;;  %v1393_v60 = vpack.c.bf16 %v2460_v20, %v2460_v20  ;;  %s2464_s7 = sphi %s2983_s7, %s3157_s7   ;;  %v2460_v20 = vphi %v2981_v20, %v1695_v20   ;;  %v2456_v19 = vphi %v2979_v19, %v1693_v19   ;;  %v2452_v18 = vphi %v2977_v18, %v3156_v18  }
 0x316   : > { %1618 = vmatprep.mubr.bf16.mxu0 %v2468_v5  ;;  %1659 = vmatprep.mubr.bf16.mxu1 %v2468_v5  ;;  %v2341_v1 = vld [vmem:[%s3149_s6 + $0xc4] ss:$16 sps:$4 sm:$0xff]   ;;  %v2343_v21 = vld [vmem:[%s3149_s6 + $0xc0] ss:$16 sps:$4 sm:$0xff]   ;;  %v2349_v23 = vld [vmem:[%s3149_s6 + $0xec] ss:$16 sps:$4 sm:$0xff]   ;;  %v1699_v48 = vstv %s3055_s15 }
 0x317   : > { %1586 = vmatprep.subr.bf16.mxu0 %v2338_v3  ;;  %2337 = vset.pattern.permute.xlu0 %v2468_v5  ;;  %v2344_v22 = vld [vmem:[%s3149_s6 + $0xa4] ss:$16 sps:$4 sm:$0xff]   ;;  %v2352_v11 = vld [vmem:[%s3149_s6 + $0xe8] ss:$16 sps:$4 sm:$0xff]   ;;  %v2346_v24 = vld [vmem:[%s3149_s6 + $0xa0] ss:$16 sps:$4 sm:$0xff]  }
 0x318   : > { %1587 = vmatpush1.bf16.msra.mxu0 %v2340_v4  ;;  %1627 = vmatprep.subr.bf16.mxu1 %v2349_v23  ;;  %v2347_v25 = vld [vmem:[%s3149_s6 + $0x84] ss:$16 sps:$4 sm:$0xff]   ;;  %v2355_v26 = vld [vmem:[%s3149_s6 + $0xcc] ss:$16 sps:$4 sm:$0xff]   ;;  %v2358_v27 = vld [vmem:[%s3149_s6 + $0xc8] ss:$16 sps:$4 sm:$0xff]  }
 0x319   : > { %1588 = vmatprep.subr.bf16.mxu0 %v2341_v1  ;;  %1628 = vmatpush1.bf16.msra.mxu1 %v2352_v11  ;;  %v2351_v28 = vld [vmem:[%s3149_s6 + $0x80] ss:$16 sps:$4 sm:$0xff]   ;;  %v2353_v29 = vld [vmem:[%s3149_s6 + $0x64] ss:$16 sps:$4 sm:$0xff]   ;;  %v2361_v30 = vld [vmem:[%s3149_s6 + $0xac] ss:$16 sps:$4 sm:$0xff]  }
 0x31a   : > { %1629 = vmatprep.subr.bf16.mxu1 %v2355_v26  ;;  %v2364_v31 = vld [vmem:[%s3149_s6 + $0xa8] ss:$16 sps:$4 sm:$0xff]   ;;  %v2367_v32 = vld [vmem:[%s3149_s6 + $0x8c] ss:$16 sps:$4 sm:$0xff]   ;;  %v2357_v33 = vld [vmem:[%s3149_s6 + $0x60] ss:$16 sps:$4 sm:$0xff]  }
 0x31b   : > { %v2359_v34 = vld [vmem:[%s3149_s6 + $0x44] ss:$16 sps:$4 sm:$0xff]   ;;  %v2370_v35 = vld [vmem:[%s3149_s6 + $0x88] ss:$16 sps:$4 sm:$0xff]   ;;  %v2373_v36 = vld [vmem:[%s3149_s6 + $0x6c] ss:$16 sps:$4 sm:$0xff]  }
 0x31c   : > { %1589 = vmatpush1.bf16.msra.mxu0 %v2343_v21  ;;  %v2363_v37 = vld [vmem:[%s3149_s6 + $0x40] ss:$16 sps:$4 sm:$0xff]   ;;  %v2365_v43 = vld [vmem:[%s3149_s6 + $0x24] ss:$16 sps:$4 sm:$0xff]   ;;  %v2376_v49 = vld [vmem:[%s3149_s6 + $0x68] ss:$16 sps:$4 sm:$0xff]  }
 0x31d   : > { %1590 = vmatprep.subr.bf16.mxu0 %v2344_v22  ;;  %1630 = vmatpush1.bf16.msra.mxu1 %v2358_v27  ;;  %v2377_v50 = vld [vmem:[%s3149_s6 + $0x4c] ss:$16 sps:$4 sm:$0xff]   ;;  %v1697_v51 = vld [vmem:[%s3145_s1] sm:$0xff]  ;;  %v2379_v55 = vld [vmem:[%s3149_s6 + $0x48] ss:$16 sps:$4 sm:$0xff]   ;;  %s1998_s18 = sshll.u32 %s2464_s7, 3  ;;  %s3157_s7 = smov %s3055_s15 }
 0x31e   : > { %1631 = vmatprep.subr.bf16.mxu1 %v2361_v30  ;;  %vm1700_vm0 = vcmp.eq.s32.totalorder %v1697_v51, %v1699_v48  ;;  %v2369_v52 = vld [vmem:[%s3149_s6 + $0x20] ss:$16 sps:$4 sm:$0xff]   ;;  %v2371_v54 = vld [vmem:[%s3149_s6 + $0x4] ss:$16 sps:$4 sm:$0xff]   ;;  %v2380_v56 = vld [vmem:[%s3149_s6 + $0x2c] ss:$16 sps:$4 sm:$0xff]  }
 0x31f   : > { %v1701_v53 = vsel %vm1700_vm0, 1, %v2468_v5  ;;  %v2375_v57 = vld [vmem:[%s3149_s6] ss:$16 sps:$4 sm:$0xff]   ;;  %v2382_v58 = vld [vmem:[%s3149_s6 + $0x28] ss:$16 sps:$4 sm:$0xff]   ;;  %s1382_s19 = sshra.s32 %s1998_s18, 3 }
 0x320   : > { %1591 = vmatpush1.bf16.msra.mxu0 %v2346_v24  ;;  %1703 = vperm.xlu0 %2337, %v1701_v53   ;;  %v2383_v59 = vld [vmem:[%s3149_s6 + $0xc] ss:$16 sps:$4 sm:$0xff]   ;;  %v2385_v61 = vld [vmem:[%s3149_s6 + $0x8] ss:$16 sps:$4 sm:$0xff]   ;;  %s2078_s20 = sshll.u32 %s1382_s19, 4  ;;  %p1374_p1 = scmp.ge.s32.totalorder %s3055_s15, 8  }
 0x321   : > { %1592 = vmatprep.subr.bf16.mxu0 %v2347_v25  ;;  %1632 = vmatpush1.bf16.msra.mxu1 %v2364_v31  ;;  %s1386_s2 = scalar_lea.vmem [#allocation3], %s2078_s20  ;;  %v2402_v27 = vld [vmem:[%s3151_s8 + $0x38] sm:$0xff] (%p1374_p1)   ;;  %vm2470_vm2 = vmmov (%p1374_p1), 0   ;;  %v2404_v30 = vld [vmem:[%s3151_s8 + $0x28] sm:$0xff] (%p1374_p1)   ;;  %v2407_v31 = vld [vmem:[%s3151_s8 + $0x10] sm:$0xff] (%p1374_p1)  }
 0x322   : > { %1633 = vmatprep.subr.bf16.mxu1 %v2367_v32  ;;  %v1387_v62 = vld [vmem:[%s1386_s2] sm:$0xff]  ;;  %v1388_v12 = vld [vmem:[%s1386_s2 + $0x8] sm:$0xff] }
 0x323   : > { %v1389_v63 = vunpack.c.l.bf16 %v1387_v62  ;;  %v1390_v0 = vunpack.c.h.bf16 %v1387_v62  ;;  %v1392_v41 = vunpack.c.h.bf16 %v1388_v12  ;;  %v1391_v47 = vunpack.c.l.bf16 %v1388_v12  ;;  %v2408_v32 = vld [vmem:[%s3151_s8 + $0x8] sm:$0xff] (%p1374_p1)  }
 0x324   : > { %1593 = vmatpush1.bf16.msra.mxu0 %v2351_v28  ;;  %v2469_v28 = vmov (%p1374_p1), 0.0  }
 0x325   : > { %1594 = vmatprep.subr.bf16.mxu0 %v2353_v29  ;;  %1634 = vmatpush1.bf16.msra.mxu1 %v2370_v35  ;;  %v2403_v29 = vld [vmem:[%s3151_s8 + $0x30] sm:$0xff] (%p1374_p1)   ;;  %v2036_v35 = vld [vmem:[%s3152_s9] ss:$0 sm:$0xff] (%p1374_p1) }
 0x326   : > { %1635 = vmatprep.subr.bf16.mxu1 %v2373_v36 }
 0x328   : > { %1595 = vmatpush1.bf16.msra.mxu0 %v2357_v33  ;;  %v2409_v33 = vld [vmem:[%s3151_s8] sm:$0xff] (%p1374_p1)  }
 0x329   : > { %1596 = vmatprep.subr.bf16.mxu0 %v2359_v34  ;;  %1636 = vmatpush1.bf16.msra.mxu1 %v2376_v49 }
 0x32a   : > { %1637 = vmatprep.subr.bf16.mxu1 %v2377_v50 }
 0x32c   : > { %1597 = vmatpush1.bf16.msra.mxu0 %v2363_v37 }
 0x32d   : > { %1598 = vmatprep.subr.bf16.mxu0 %v2365_v43  ;;  %1638 = vmatpush1.bf16.msra.mxu1 %v2379_v55 }
 0x32e   : > { %1639 = vmatprep.subr.bf16.mxu1 %v2380_v56 }
 0x330   : > { %1599 = vmatpush1.bf16.msra.mxu0 %v2369_v52 }
 0x331   : > { %1600 = vmatprep.subr.bf16.mxu0 %v2371_v54  ;;  %1640 = vmatpush1.bf16.msra.mxu1 %v2382_v58 }
 0x332   : > { %1641 = vmatprep.subr.bf16.mxu1 %v2383_v59 }
 0x334   : > { %1601 = vmatpush1.bf16.msra.mxu0 %v2375_v57 }
 0x335   : > { %1642 = vmatpush1.bf16.msra.mxu1 %v2385_v61  ;;  %2088 = vmatprep.subr.bf16.mxu0 (%p1374_p1), %v2469_v28 }
 0x337   : > { %1619 = vmatmul.mubr.bf16.vlgmr.msra.gmra.mxu0 %v1393_v60 }
 0x338   : > { %1660 = vmatmul.mubr.bf16.vlgmr.msra.gmra.mxu1 %v1393_v60  ;;  %2089 = vmatpush3.bf16.msra.mxu0 (%p1374_p1), %v2402_v27 }
 0x339   :  { %2104 = vmatprep.mubr.msk.bf16.mxu0 (%p1374_p1), %vm2470_vm2, %v2469_v28  ;;  %2090 = vmatprep.subr.bf16.mxu0 (%p1374_p1), %v2469_v28 }
 0x33c   :  { %2091 = vmatpush3.bf16.msra.mxu0 (%p1374_p1), %v2403_v29 }
 0x33d   :  { %2092 = vmatprep.subr.bf16.mxu0 (%p1374_p1), %v2469_v28 }
 0x340   :  { %2093 = vmatpush3.bf16.msra.mxu0 (%p1374_p1), %v2404_v30 }
 0x341   :  { %2094 = vmatprep.subr.bf16.mxu0 (%p1374_p1), %v2469_v28 }
 0x39b   : > { %v1704_v11 = vpop.permute.xlu0 %1703 }
 0x39c   : > { %vm1705_vm1 = vcmp.eq.s32.totalorder %v1704_v11, 1 }
 0x3f7   : > { %v1620_v2 = vpop.f32.mrf.mxu0 }
 0x3f8   : > { %v1668_v6 = vadd.f32 %v1620_v2, %v1389_v63  ;;  %v1661_v40 = vpop.f32.mrf.mxu1 }
 0x3f9   : > { %v1622_v7 = vpop.f32.mrf.mxu0  ;;  %v1670_v13 = vadd.f32 %v1661_v40, %v1391_v47 }
 0x3fa   : > { %v2033_v8 = vmul.f32 -1.442695, %v1668_v6  ;;  %v1669_v9 = vadd.f32 %v1622_v7, %v1390_v0  ;;  %v1663_v45 = vpop.f32.mrf.mxu1 }
 0x3fb   : > { %v1624_v10 = vpop.f32.mrf.mxu0  ;;  %v1671_v42 = vadd.f32 %v1663_v45, %v1392_v41 }
 0x3fc   : > { %2386 = vpow2.f32 %v2033_v8  ;;  %v2034_v39 = vmul.f32 -1.442695, %v1669_v9  ;;  %v1665_v46 = vpop.f32.mrf.mxu1 }
 0x3fd   : > { %v1625_v44 = vpop.f32.mrf.mxu0  ;;  %v2035_v14 = vmul.f32 -1.442695, %v1671_v42 }
 0x3fe   : > { %2388 = vpow2.f32 %v2034_v39  ;;  %v1666_v38 = vpop.f32.mrf.mxu1 }
 0x3ff   : > { %2390 = vtanh.f32 %v1670_v13 }
 0x400   : > { %2392 = vpow2.f32 %v2035_v14 }
 0x409   : > { %v2387_v15 = vpop.eup %2386 }
 0x40a   : > { %v1675_v16 = vadd.f32 1.0, %v2387_v15 }
 0x40b   : > { %v2389_v17 = vpop.eup %2388 }
 0x40c   : > { %2394 = vrcp.f32 %v1675_v16  ;;  %v1681_v20 = vadd.f32 1.0, %v2389_v17  ;;  %v2391_v3 = vpop.eup %2390 }
 0x40d   : > { %v2393_v4 = vpop.eup %2392 }
 0x40e   : > { %2396 = vrcp.f32 %v1681_v20  ;;  %v1688_v21 = vadd.f32 1.0, %v2393_v4 }
 0x410   : > { %2398 = vrcp.f32 %v1688_v21 }
 0x419   : > { %v2395_v5 = vpop.eup %2394 }
 0x41a   : > { %v1692_v23 = vmul.f32 %v2395_v5, %v2391_v3 }
 0x41b   : > { %v2397_v1 = vpop.eup %2396 }
 0x41c   : > { %v1691_v22 = vmul.f32 %v2456_v19, %v2397_v1 }
 0x41d   : > { %v2399_v24 = vpop.eup %2398 }
 0x41e   : > { %v1693_v19 = vadd.f32 %v1692_v23, %v1691_v22  }
 0x420   : > { %2400 = vtanh.f32 %v1693_v19  ;;  %v2406_v19 = vld [vmem:[%s3151_s8 + $0x18] sm:$0xff] (%p1374_p1)  }
 0x42d   : > { %v2401_v25 = vpop.eup %2400  ;;  %1376 = sbr.rel (!%p1374_p1) target bundleno = 789 (0x315), region = 88 }
 0x42e   : > { %v1695_v20 = vmul.f32 %v2401_v25, %v2399_v24  }
 0x430   : > { %v1706_v26 = vsel %vm1705_vm1, %v1695_v20, %v2452_v18  }
 0x431   : > { %v3156_v18 = vmov %v1706_v26  ;;  %v1707_v34 = vpack.c.bf16 (%p1374_p1), %v1706_v26, %v1706_v26 }
 0x432   :  { %v2405_v18 = vld [vmem:[%s3151_s8 + $0x20] sm:$0xff]  }
 0x433   :  { %2095 = vmatpush3.bf16.msra.mxu0 %v2405_v18 }
 0x434   :  { %2096 = vmatprep.subr.bf16.mxu0 %v2469_v28 }
 0x437   :  { %2097 = vmatpush3.bf16.msra.mxu0 %v2406_v19 }
 0x438   :  { %2098 = vmatprep.subr.bf16.mxu0 %v2469_v28 }
 0x43b   :  { %2099 = vmatpush3.bf16.msra.mxu0 %v2407_v31 }
 0x43c   :  { %2100 = vmatprep.subr.bf16.mxu0 %v2469_v28 }
 0x43f   :  { %2101 = vmatpush3.bf16.msra.mxu0 %v2408_v32 }
 0x440   :  { %2102 = vmatprep.subr.bf16.mxu0 %v2469_v28 }
 0x443   :  { %2103 = vmatpush3.bf16.msra.mxu0 %v2409_v33 }
 0x446   :  { %2105 = vmatmul.mubr.bf16.vlgmr.msra.gmra.mxu0 %v1707_v34 }
 0x506   :  { %v1813_v36 = vpop.f32.mrf.mxu0 }
 0x507   :  { %v1814_v37 = vadd.f32 %v2036_v35, %v1813_v36 }
 0x508   :  { %v2106_v43 = vpop.f32.mrf.mxu0 }
 0x509   :  { %1819 = vst [vmem:[%s3153_s10] sm:$0xff] %v1814_v37 }
 0x50a   :  { %v1816_v48 = vpop.f32.mrf.mxu0 }
 0x50c   :  { %v2107_v49 = vpop.f32.mrf.mxu0 }

</bundles_post_ra>
